<compile_context>
chip_gen: v5e
topology: v5e:2x2
jax: 0.10.0
libtpu: 0.0.40
codegen_flags: <defaults>
</compile_context>

<pallas_src>
import numpy as np
import jax
import jax.numpy as jnp
from jax.experimental import pallas as pl
from jax.experimental.pallas import tpu as pltpu

# Problem sizes (fixed by the module; small example input).
N = 2            # batch
C = 32           # channels (module requires 32)
H = W = 8        # input spatial
K = 10           # kernel
STRIDE = 2
PAD = 5
OH = (H - 1) * STRIDE - 2 * PAD + K   # = 14 output spatial
HALF = OH // 2                        # = 7 rows/cols per parity
HALFP = 8                             # sublane-padded output column count
SUBK = K // STRIDE                    # = 5 taps per parity per axis
XPAD = (K - 1 - PAD) // STRIDE        # = 2 zero pad each side (parity space)
STAG = H + 2 * XPAD - 1               # = 11 staggered slab row extent
STAGW = STAG + 1                      # = 12 staggered slab col extent (padded)
LANES = 4 * N * C                     # = 256 lanes: (r, s, n, c)


def _dw_convt_hardsigmoid_kernel(slab_ref, w_ref, b_ref, o_ref):
    # slab_ref: (SUBK, STAG, HALFP, LANES)  l-shifted, parity-staggered, zero-padded input
    # w_ref   : (SUBK, SUBK, HALFP, LANES)  per-lane taps * 1/6, replicated over sublanes
    # b_ref   : (1, HALFP, LANES)           bias/6 + 0.5, replicated over sublanes
    # o_ref   : (HALF, HALFP, LANES)        parity-packed output (full-vreg stores)
    acc = jnp.broadcast_to(b_ref[...], (HALF, HALFP, LANES))
    for l in range(SUBK):
        for j in range(SUBK):
            # Leading-axis ref slice -> aligned full-vreg load; per-lane FMA on the VPU.
            acc = acc + slab_ref[l, j:j + HALF] * w_ref[j, l]
    # hardsigmoid with 1/6 pre-folded into w/b: just clamp to [0, 1].
    o_ref[...] = jnp.minimum(jnp.maximum(acc, 0.0), 1.0)


def _prep_params(weight, bias):
    """One-time (per model) weight/bias rearrangement, done on host with numpy.

    Returns:
      w_rep: (SUBK, SUBK, HALFP, LANES) f32, taps * 1/6, sublane-replicated
      b_rep: (1, HALFP, LANES) f32, bias/6 + 0.5, sublane-replicated
    """
    w_c = np.asarray(weight, np.float32)[:, 0]                               # (C, K, K)
    # idx[r, j] = K-1-2j-r : flipped / parity-decomposed kernel index.
    idx = np.array([[K - 1 - 2 * j - r for j in range(SUBK)] for r in range(2)])
    # wsub[c, r, s, j, l] = W[c, idx[r, j], idx[s, l]]
    wsub = w_c[:, idx[:, None, :, None], idx[None, :, None, :]]              # (C,2,2,5,5)
    w_jlrsc = np.transpose(wsub, (3, 4, 1, 2, 0)) * (1.0 / 6.0)              # (5,5,2,2,C)
    w_rep = np.broadcast_to(
        w_jlrsc[:, :, None, :, :, None, :],
        (SUBK, SUBK, HALFP, 2, 2, N, C)).reshape(SUBK, SUBK, HALFP, LANES)
    b_rep = np.broadcast_to(
        np.asarray(bias, np.float32) * (1.0 / 6.0) + 0.5,
        (1, HALFP, 4 * N, C)).reshape(1, HALFP, LANES)
    return jnp.asarray(w_rep), jnp.asarray(b_rep)


@jax.jit
def _forward(x_nchw, w_rep, b_rep):
    """x_nchw: (N, C, H, W) f32; w_rep/b_rep: precomputed by _prep_params."""
    # Layout plumbing (tiny arrays, fused by XLA): NCHW -> (H, W, N, C), zero-pad,
    # fold the four output parities (r, s) into the lane axis by staggering, then
    # pre-stack the 5 column (l) shifts so all in-kernel tap offsets are free
    # leading-axis slices:
    #   slab[l, h, w8, (r, s, n, c)] = xp[h + r, w8 + l + s, n, c]
    x = jnp.transpose(x_nchw.astype(jnp.float32), (2, 3, 0, 1))              # (H, W, N, C)
    xp = jnp.pad(x, ((XPAD, XPAD), (XPAD, XPAD + 1), (0, 0), (0, 0)))        # (12, 13, N, C)
    crops = [xp[r:r + STAG, s:s + STAGW] for r in range(2) for s in range(2)]
    stp = jnp.stack(crops, axis=2).reshape(STAG, STAGW, LANES)               # (11, 12, 256)
    slab = jnp.stack([stp[:, l:l + HALFP, :] for l in range(SUBK)], axis=0)  # (5, 11, 8, 256)

    # Single invocation, no grid: everything (~0.7 MiB) lives in VMEM on all gens.
    # TODO(synk): on v5e (lower HBM BW) an in-kernel pltpu.roll variant on the
    # un-expanded (11, 12, 256) slab would shave the extra ~0.5 MB prologue DMA.
    out = pl.pallas_call(
        _dw_convt_hardsigmoid_kernel,
        out_shape=jax.ShapeDtypeStruct((HALF, HALFP, LANES), jnp.float32),
        in_specs=[pl.BlockSpec(memory_space=pltpu.MemorySpace.VMEM)] * 3,
        out_specs=pl.BlockSpec(memory_space=pltpu.MemorySpace.VMEM),
    )(slab, w_rep, b_rep)

    # Crop the padded column, un-pack parities:
    #   y[n, ch, 2a+r, 2c+s] = out[a, c, (r, s, n, ch)]
    out = out[:, :HALF, :].reshape(HALF, HALF, 2, 2, N, C)                   # (a, c, r, s, n, ch)
    return jnp.transpose(out, (4, 5, 0, 2, 1, 3)).reshape(N, C, OH, OH)


def make_depthwise_convtranspose_hardsigmoid(weight, bias):
    """Build the forward fn with all static weight prep hoisted out of the call path."""
    w_rep, b_rep = _prep_params(weight, bias)

    def fwd(x_nchw):
        return _forward(x_nchw, w_rep, b_rep)

    return fwd


def _reference_numpy(x, w, b):
    """Direct NCHW conv-transpose reference (numpy), then hardsigmoid."""
    x = np.asarray(x, np.float32)
    w = np.asarray(w, np.float32)
    b = np.asarray(b, np.float32)
    full = (H - 1) * STRIDE + K
    y_full = np.zeros((N, C, full, full), np.float32)
    span = (H - 1) * STRIDE + 1
    for kh in range(K):
        for kw in range(K):
            y_full[:, :, kh:kh + span:STRIDE, kw:kw + span:STRIDE] += (
                x * w[None, :, 0, kh, kw][:, :, None, None]
            )
    y = y_full[:, :, PAD:PAD + OH, PAD:PAD + OH] + b[None, :, None, None]
    return np.clip(y + 3.0, 0.0, 6.0) / 6.0


if __name__ == "__main__":
    key = jax.random.PRNGKey(0)
    kx, kw, kb = jax.random.split(key, 3)

    x = jax.random.normal(kx, (N, C, H, W), dtype=jnp.float32)
    # ConvTranspose2d(32, 32, 10, groups=32): weight (32, 1, 10, 10), bias (32,)
    fan = K * K
    bound = 1.0 / np.sqrt(fan)
    weight = jax.random.uniform(kw, (C, 1, K, K), dtype=jnp.float32,
                                minval=-bound, maxval=bound)
    bias = jax.random.uniform(kb, (C,), dtype=jnp.float32, minval=-bound, maxval=bound)

    fwd = make_depthwise_convtranspose_hardsigmoid(weight, bias)
    y = jax.block_until_ready(fwd(x))

    y_ref = _reference_numpy(x, weight, bias)
    assert y.shape == (N, C, OH, OH), y.shape
    np.testing.assert_allclose(np.asarray(y), y_ref, rtol=1e-4, atol=1e-4)

    print("KERNEL_OK")
</pallas_src>

<mosaic_0001>
module attributes {stable_mosaic.version = 11 : i64} {
  func.func @_dw_convt_hardsigmoid_kernel(%arg0: memref<5x11x8x256xf32, #tpu.memory_space<vmem>>, %arg1: memref<5x5x8x256xf32, #tpu.memory_space<vmem>>, %arg2: memref<1x8x256xf32, #tpu.memory_space<vmem>>, %arg3: memref<7x8x256xf32, #tpu.memory_space<vmem>>) attributes {dimension_semantics = [], scalar_prefetch = 0 : i64, scratch_operands = 0 : i64, tpu.core_type = #tpu.core_type<tc>} {
    %c0 = arith.constant 0 : index
    %c0_0 = arith.constant 0 : index
    %c0_1 = arith.constant 0 : index
    %0 = vector.load %arg2[%c0, %c0_0, %c0_1] : memref<1x8x256xf32, #tpu.memory_space<vmem>>, vector<1x8x256xf32>
    %1 = vector.shape_cast %0 : vector<1x8x256xf32> to vector<1x8x256xf32>
    %2 = vector.broadcast %1 : vector<1x8x256xf32> to vector<7x8x256xf32>
    %c0_2 = arith.constant 0 : index
    %c0_3 = arith.constant 0 : index
    %c0_4 = arith.constant 0 : index
    %c0_5 = arith.constant 0 : index
    %3 = vector.load %arg0[%c0_2, %c0_3, %c0_4, %c0_5] : memref<5x11x8x256xf32, #tpu.memory_space<vmem>>, vector<1x7x8x256xf32>
    %4 = vector.shape_cast %3 : vector<1x7x8x256xf32> to vector<7x8x256xf32>
    %c0_6 = arith.constant 0 : index
    %c0_7 = arith.constant 0 : index
    %c0_8 = arith.constant 0 : index
    %c0_9 = arith.constant 0 : index
    %5 = vector.load %arg1[%c0_6, %c0_7, %c0_8, %c0_9] : memref<5x5x8x256xf32, #tpu.memory_space<vmem>>, vector<1x1x8x256xf32>
    %6 = vector.shape_cast %5 : vector<1x1x8x256xf32> to vector<8x256xf32>
    %7 = vector.shape_cast %6 : vector<8x256xf32> to vector<1x8x256xf32>
    %8 = vector.broadcast %7 : vector<1x8x256xf32> to vector<7x8x256xf32>
    %9 = arith.mulf %4, %8 : vector<7x8x256xf32>
    %10 = arith.addf %2, %9 : vector<7x8x256xf32>
    %c0_10 = arith.constant 0 : index
    %c1 = arith.constant 1 : index
    %c0_11 = arith.constant 0 : index
    %c0_12 = arith.constant 0 : index
    %11 = vector.load %arg0[%c0_10, %c1, %c0_11, %c0_12] : memref<5x11x8x256xf32, #tpu.memory_space<vmem>>, vector<1x7x8x256xf32>
    %12 = vector.shape_cast %11 : vector<1x7x8x256xf32> to vector<7x8x256xf32>
    %c1_13 = arith.constant 1 : index
    %c0_14 = arith.constant 0 : index
    %c0_15 = arith.constant 0 : index
    %c0_16 = arith.constant 0 : index
    %13 = vector.load %arg1[%c1_13, %c0_14, %c0_15, %c0_16] : memref<5x5x8x256xf32, #tpu.memory_space<vmem>>, vector<1x1x8x256xf32>
    %14 = vector.shape_cast %13 : vector<1x1x8x256xf32> to vector<8x256xf32>
    %15 = vector.shape_cast %14 : vector<8x256xf32> to vector<1x8x256xf32>
    %16 = vector.broadcast %15 : vector<1x8x256xf32> to vector<7x8x256xf32>
    %17 = arith.mulf %12, %16 : vector<7x8x256xf32>
    %18 = arith.addf %10, %17 : vector<7x8x256xf32>
    %c0_17 = arith.constant 0 : index
    %c2 = arith.constant 2 : index
    %c0_18 = arith.constant 0 : index
    %c0_19 = arith.constant 0 : index
    %19 = vector.load %arg0[%c0_17, %c2, %c0_18, %c0_19] : memref<5x11x8x256xf32, #tpu.memory_space<vmem>>, vector<1x7x8x256xf32>
    %20 = vector.shape_cast %19 : vector<1x7x8x256xf32> to vector<7x8x256xf32>
    %c2_20 = arith.constant 2 : index
    %c0_21 = arith.constant 0 : index
    %c0_22 = arith.constant 0 : index
    %c0_23 = arith.constant 0 : index
    %21 = vector.load %arg1[%c2_20, %c0_21, %c0_22, %c0_23] : memref<5x5x8x256xf32, #tpu.memory_space<vmem>>, vector<1x1x8x256xf32>
    %22 = vector.shape_cast %21 : vector<1x1x8x256xf32> to vector<8x256xf32>
    %23 = vector.shape_cast %22 : vector<8x256xf32> to vector<1x8x256xf32>
    %24 = vector.broadcast %23 : vector<1x8x256xf32> to vector<7x8x256xf32>
    %25 = arith.mulf %20, %24 : vector<7x8x256xf32>
    %26 = arith.addf %18, %25 : vector<7x8x256xf32>
    %c0_24 = arith.constant 0 : index
    %c3 = arith.constant 3 : index
    %c0_25 = arith.constant 0 : index
    %c0_26 = arith.constant 0 : index
    %27 = vector.load %arg0[%c0_24, %c3, %c0_25, %c0_26] : memref<5x11x8x256xf32, #tpu.memory_space<vmem>>, vector<1x7x8x256xf32>
    %28 = vector.shape_cast %27 : vector<1x7x8x256xf32> to vector<7x8x256xf32>
    %c3_27 = arith.constant 3 : index
    %c0_28 = arith.constant 0 : index
    %c0_29 = arith.constant 0 : index
    %c0_30 = arith.constant 0 : index
    %29 = vector.load %arg1[%c3_27, %c0_28, %c0_29, %c0_30] : memref<5x5x8x256xf32, #tpu.memory_space<vmem>>, vector<1x1x8x256xf32>
    %30 = vector.shape_cast %29 : vector<1x1x8x256xf32> to vector<8x256xf32>
    %31 = vector.shape_cast %30 : vector<8x256xf32> to vector<1x8x256xf32>
    %32 = vector.broadcast %31 : vector<1x8x256xf32> to vector<7x8x256xf32>
    %33 = arith.mulf %28, %32 : vector<7x8x256xf32>
    %34 = arith.addf %26, %33 : vector<7x8x256xf32>
    %c0_31 = arith.constant 0 : index
    %c4 = arith.constant 4 : index
    %c0_32 = arith.constant 0 : index
    %c0_33 = arith.constant 0 : index
    %35 = vector.load %arg0[%c0_31, %c4, %c0_32, %c0_33] : memref<5x11x8x256xf32, #tpu.memory_space<vmem>>, vector<1x7x8x256xf32>
    %36 = vector.shape_cast %35 : vector<1x7x8x256xf32> to vector<7x8x256xf32>
    %c4_34 = arith.constant 4 : index
    %c0_35 = arith.constant 0 : index
    %c0_36 = arith.constant 0 : index
    %c0_37 = arith.constant 0 : index
    %37 = vector.load %arg1[%c4_34, %c0_35, %c0_36, %c0_37] : memref<5x5x8x256xf32, #tpu.memory_space<vmem>>, vector<1x1x8x256xf32>
    %38 = vector.shape_cast %37 : vector<1x1x8x256xf32> to vector<8x256xf32>
    %39 = vector.shape_cast %38 : vector<8x256xf32> to vector<1x8x256xf32>
    %40 = vector.broadcast %39 : vector<1x8x256xf32> to vector<7x8x256xf32>
    %41 = arith.mulf %36, %40 : vector<7x8x256xf32>
    %42 = arith.addf %34, %41 : vector<7x8x256xf32>
    %c1_38 = arith.constant 1 : index
    %c0_39 = arith.constant 0 : index
    %c0_40 = arith.constant 0 : index
    %c0_41 = arith.constant 0 : index
    %43 = vector.load %arg0[%c1_38, %c0_39, %c0_40, %c0_41] : memref<5x11x8x256xf32, #tpu.memory_space<vmem>>, vector<1x7x8x256xf32>
    %44 = vector.shape_cast %43 : vector<1x7x8x256xf32> to vector<7x8x256xf32>
    %c0_42 = arith.constant 0 : index
    %c1_43 = arith.constant 1 : index
    %c0_44 = arith.constant 0 : index
    %c0_45 = arith.constant 0 : index
    %45 = vector.load %arg1[%c0_42, %c1_43, %c0_44, %c0_45] : memref<5x5x8x256xf32, #tpu.memory_space<vmem>>, vector<1x1x8x256xf32>
    %46 = vector.shape_cast %45 : vector<1x1x8x256xf32> to vector<8x256xf32>
    %47 = vector.shape_cast %46 : vector<8x256xf32> to vector<1x8x256xf32>
    %48 = vector.broadcast %47 : vector<1x8x256xf32> to vector<7x8x256xf32>
    %49 = arith.mulf %44, %48 : vector<7x8x256xf32>
    %50 = arith.addf %42, %49 : vector<7x8x256xf32>
    %c1_46 = arith.constant 1 : index
    %c1_47 = arith.constant 1 : index
    %c0_48 = arith.constant 0 : index
    %c0_49 = arith.constant 0 : index
    %51 = vector.load %arg0[%c1_46, %c1_47, %c0_48, %c0_49] : memref<5x11x8x256xf32, #tpu.memory_space<vmem>>, vector<1x7x8x256xf32>
    %52 = vector.shape_cast %51 : vector<1x7x8x256xf32> to vector<7x8x256xf32>
    %c1_50 = arith.constant 1 : index
    %c1_51 = arith.constant 1 : index
    %c0_52 = arith.constant 0 : index
    %c0_53 = arith.constant 0 : index
    %53 = vector.load %arg1[%c1_50, %c1_51, %c0_52, %c0_53] : memref<5x5x8x256xf32, #tpu.memory_space<vmem>>, vector<1x1x8x256xf32>
    %54 = vector.shape_cast %53 : vector<1x1x8x256xf32> to vector<8x256xf32>
    %55 = vector.shape_cast %54 : vector<8x256xf32> to vector<1x8x256xf32>
    %56 = vector.broadcast %55 : vector<1x8x256xf32> to vector<7x8x256xf32>
    %57 = arith.mulf %52, %56 : vector<7x8x256xf32>
    %58 = arith.addf %50, %57 : vector<7x8x256xf32>
    %c1_54 = arith.constant 1 : index
    %c2_55 = arith.constant 2 : index
    %c0_56 = arith.constant 0 : index
    %c0_57 = arith.constant 0 : index
    %59 = vector.load %arg0[%c1_54, %c2_55, %c0_56, %c0_57] : memref<5x11x8x256xf32, #tpu.memory_space<vmem>>, vector<1x7x8x256xf32>
    %60 = vector.shape_cast %59 : vector<1x7x8x256xf32> to vector<7x8x256xf32>
    %c2_58 = arith.constant 2 : index
    %c1_59 = arith.constant 1 : index
    %c0_60 = arith.constant 0 : index
    %c0_61 = arith.constant 0 : index
    %61 = vector.load %arg1[%c2_58, %c1_59, %c0_60, %c0_61] : memref<5x5x8x256xf32, #tpu.memory_space<vmem>>, vector<1x1x8x256xf32>
    %62 = vector.shape_cast %61 : vector<1x1x8x256xf32> to vector<8x256xf32>
    %63 = vector.shape_cast %62 : vector<8x256xf32> to vector<1x8x256xf32>
    %64 = vector.broadcast %63 : vector<1x8x256xf32> to vector<7x8x256xf32>
    %65 = arith.mulf %60, %64 : vector<7x8x256xf32>
    %66 = arith.addf %58, %65 : vector<7x8x256xf32>
    %c1_62 = arith.constant 1 : index
    %c3_63 = arith.constant 3 : index
    %c0_64 = arith.constant 0 : index
    %c0_65 = arith.constant 0 : index
    %67 = vector.load %arg0[%c1_62, %c3_63, %c0_64, %c0_65] : memref<5x11x8x256xf32, #tpu.memory_space<vmem>>, vector<1x7x8x256xf32>
    %68 = vector.shape_cast %67 : vector<1x7x8x256xf32> to vector<7x8x256xf32>
    %c3_66 = arith.constant 3 : index
    %c1_67 = arith.constant 1 : index
    %c0_68 = arith.constant 0 : index
    %c0_69 = arith.constant 0 : index
    %69 = vector.load %arg1[%c3_66, %c1_67, %c0_68, %c0_69] : memref<5x5x8x256xf32, #tpu.memory_space<vmem>>, vector<1x1x8x256xf32>
    %70 = vector.shape_cast %69 : vector<1x1x8x256xf32> to vector<8x256xf32>
    %71 = vector.shape_cast %70 : vector<8x256xf32> to vector<1x8x256xf32>
    %72 = vector.broadcast %71 : vector<1x8x256xf32> to vector<7x8x256xf32>
    %73 = arith.mulf %68, %72 : vector<7x8x256xf32>
    %74 = arith.addf %66, %73 : vector<7x8x256xf32>
    %c1_70 = arith.constant 1 : index
    %c4_71 = arith.constant 4 : index
    %c0_72 = arith.constant 0 : index
    %c0_73 = arith.constant 0 : index
    %75 = vector.load %arg0[%c1_70, %c4_71, %c0_72, %c0_73] : memref<5x11x8x256xf32, #tpu.memory_space<vmem>>, vector<1x7x8x256xf32>
    %76 = vector.shape_cast %75 : vector<1x7x8x256xf32> to vector<7x8x256xf32>
    %c4_74 = arith.constant 4 : index
    %c1_75 = arith.constant 1 : index
    %c0_76 = arith.constant 0 : index
    %c0_77 = arith.constant 0 : index
    %77 = vector.load %arg1[%c4_74, %c1_75, %c0_76, %c0_77] : memref<5x5x8x256xf32, #tpu.memory_space<vmem>>, vector<1x1x8x256xf32>
    %78 = vector.shape_cast %77 : vector<1x1x8x256xf32> to vector<8x256xf32>
    %79 = vector.shape_cast %78 : vector<8x256xf32> to vector<1x8x256xf32>
    %80 = vector.broadcast %79 : vector<1x8x256xf32> to vector<7x8x256xf32>
    %81 = arith.mulf %76, %80 : vector<7x8x256xf32>
    %82 = arith.addf %74, %81 : vector<7x8x256xf32>
    %c2_78 = arith.constant 2 : index
    %c0_79 = arith.constant 0 : index
    %c0_80 = arith.constant 0 : index
    %c0_81 = arith.constant 0 : index
    %83 = vector.load %arg0[%c2_78, %c0_79, %c0_80, %c0_81] : memref<5x11x8x256xf32, #tpu.memory_space<vmem>>, vector<1x7x8x256xf32>
    %84 = vector.shape_cast %83 : vector<1x7x8x256xf32> to vector<7x8x256xf32>
    %c0_82 = arith.constant 0 : index
    %c2_83 = arith.constant 2 : index
    %c0_84 = arith.constant 0 : index
    %c0_85 = arith.constant 0 : index
    %85 = vector.load %arg1[%c0_82, %c2_83, %c0_84, %c0_85] : memref<5x5x8x256xf32, #tpu.memory_space<vmem>>, vector<1x1x8x256xf32>
    %86 = vector.shape_cast %85 : vector<1x1x8x256xf32> to vector<8x256xf32>
    %87 = vector.shape_cast %86 : vector<8x256xf32> to vector<1x8x256xf32>
    %88 = vector.broadcast %87 : vector<1x8x256xf32> to vector<7x8x256xf32>
    %89 = arith.mulf %84, %88 : vector<7x8x256xf32>
    %90 = arith.addf %82, %89 : vector<7x8x256xf32>
    %c2_86 = arith.constant 2 : index
    %c1_87 = arith.constant 1 : index
    %c0_88 = arith.constant 0 : index
    %c0_89 = arith.constant 0 : index
    %91 = vector.load %arg0[%c2_86, %c1_87, %c0_88, %c0_89] : memref<5x11x8x256xf32, #tpu.memory_space<vmem>>, vector<1x7x8x256xf32>
    %92 = vector.shape_cast %91 : vector<1x7x8x256xf32> to vector<7x8x256xf32>
    %c1_90 = arith.constant 1 : index
    %c2_91 = arith.constant 2 : index
    %c0_92 = arith.constant 0 : index
    %c0_93 = arith.constant 0 : index
    %93 = vector.load %arg1[%c1_90, %c2_91, %c0_92, %c0_93] : memref<5x5x8x256xf32, #tpu.memory_space<vmem>>, vector<1x1x8x256xf32>
    %94 = vector.shape_cast %93 : vector<1x1x8x256xf32> to vector<8x256xf32>
    %95 = vector.shape_cast %94 : vector<8x256xf32> to vector<1x8x256xf32>
    %96 = vector.broadcast %95 : vector<1x8x256xf32> to vector<7x8x256xf32>
    %97 = arith.mulf %92, %96 : vector<7x8x256xf32>
    %98 = arith.addf %90, %97 : vector<7x8x256xf32>
    %c2_94 = arith.constant 2 : index
    %c2_95 = arith.constant 2 : index
    %c0_96 = arith.constant 0 : index
    %c0_97 = arith.constant 0 : index
    %99 = vector.load %arg0[%c2_94, %c2_95, %c0_96, %c0_97] : memref<5x11x8x256xf32, #tpu.memory_space<vmem>>, vector<1x7x8x256xf32>
    %100 = vector.shape_cast %99 : vector<1x7x8x256xf32> to vector<7x8x256xf32>
    %c2_98 = arith.constant 2 : index
    %c2_99 = arith.constant 2 : index
    %c0_100 = arith.constant 0 : index
    %c0_101 = arith.constant 0 : index
    %101 = vector.load %arg1[%c2_98, %c2_99, %c0_100, %c0_101] : memref<5x5x8x256xf32, #tpu.memory_space<vmem>>, vector<1x1x8x256xf32>
    %102 = vector.shape_cast %101 : vector<1x1x8x256xf32> to vector<8x256xf32>
    %103 = vector.shape_cast %102 : vector<8x256xf32> to vector<1x8x256xf32>
    %104 = vector.broadcast %103 : vector<1x8x256xf32> to vector<7x8x256xf32>
    %105 = arith.mulf %100, %104 : vector<7x8x256xf32>
    %106 = arith.addf %98, %105 : vector<7x8x256xf32>
    %c2_102 = arith.constant 2 : index
    %c3_103 = arith.constant 3 : index
    %c0_104 = arith.constant 0 : index
    %c0_105 = arith.constant 0 : index
    %107 = vector.load %arg0[%c2_102, %c3_103, %c0_104, %c0_105] : memref<5x11x8x256xf32, #tpu.memory_space<vmem>>, vector<1x7x8x256xf32>
    %108 = vector.shape_cast %107 : vector<1x7x8x256xf32> to vector<7x8x256xf32>
    %c3_106 = arith.constant 3 : index
    %c2_107 = arith.constant 2 : index
    %c0_108 = arith.constant 0 : index
    %c0_109 = arith.constant 0 : index
    %109 = vector.load %arg1[%c3_106, %c2_107, %c0_108, %c0_109] : memref<5x5x8x256xf32, #tpu.memory_space<vmem>>, vector<1x1x8x256xf32>
    %110 = vector.shape_cast %109 : vector<1x1x8x256xf32> to vector<8x256xf32>
    %111 = vector.shape_cast %110 : vector<8x256xf32> to vector<1x8x256xf32>
    %112 = vector.broadcast %111 : vector<1x8x256xf32> to vector<7x8x256xf32>
    %113 = arith.mulf %108, %112 : vector<7x8x256xf32>
    %114 = arith.addf %106, %113 : vector<7x8x256xf32>
    %c2_110 = arith.constant 2 : index
    %c4_111 = arith.constant 4 : index
    %c0_112 = arith.constant 0 : index
    %c0_113 = arith.constant 0 : index
    %115 = vector.load %arg0[%c2_110, %c4_111, %c0_112, %c0_113] : memref<5x11x8x256xf32, #tpu.memory_space<vmem>>, vector<1x7x8x256xf32>
    %116 = vector.shape_cast %115 : vector<1x7x8x256xf32> to vector<7x8x256xf32>
    %c4_114 = arith.constant 4 : index
    %c2_115 = arith.constant 2 : index
    %c0_116 = arith.constant 0 : index
    %c0_117 = arith.constant 0 : index
    %117 = vector.load %arg1[%c4_114, %c2_115, %c0_116, %c0_117] : memref<5x5x8x256xf32, #tpu.memory_space<vmem>>, vector<1x1x8x256xf32>
    %118 = vector.shape_cast %117 : vector<1x1x8x256xf32> to vector<8x256xf32>
    %119 = vector.shape_cast %118 : vector<8x256xf32> to vector<1x8x256xf32>
    %120 = vector.broadcast %119 : vector<1x8x256xf32> to vector<7x8x256xf32>
    %121 = arith.mulf %116, %120 : vector<7x8x256xf32>
    %122 = arith.addf %114, %121 : vector<7x8x256xf32>
    %c3_118 = arith.constant 3 : index
    %c0_119 = arith.constant 0 : index
    %c0_120 = arith.constant 0 : index
    %c0_121 = arith.constant 0 : index
    %123 = vector.load %arg0[%c3_118, %c0_119, %c0_120, %c0_121] : memref<5x11x8x256xf32, #tpu.memory_space<vmem>>, vector<1x7x8x256xf32>
    %124 = vector.shape_cast %123 : vector<1x7x8x256xf32> to vector<7x8x256xf32>
    %c0_122 = arith.constant 0 : index
    %c3_123 = arith.constant 3 : index
    %c0_124 = arith.constant 0 : index
    %c0_125 = arith.constant 0 : index
    %125 = vector.load %arg1[%c0_122, %c3_123, %c0_124, %c0_125] : memref<5x5x8x256xf32, #tpu.memory_space<vmem>>, vector<1x1x8x256xf32>
    %126 = vector.shape_cast %125 : vector<1x1x8x256xf32> to vector<8x256xf32>
    %127 = vector.shape_cast %126 : vector<8x256xf32> to vector<1x8x256xf32>
    %128 = vector.broadcast %127 : vector<1x8x256xf32> to vector<7x8x256xf32>
    %129 = arith.mulf %124, %128 : vector<7x8x256xf32>
    %130 = arith.addf %122, %129 : vector<7x8x256xf32>
    %c3_126 = arith.constant 3 : index
    %c1_127 = arith.constant 1 : index
    %c0_128 = arith.constant 0 : index
    %c0_129 = arith.constant 0 : index
    %131 = vector.load %arg0[%c3_126, %c1_127, %c0_128, %c0_129] : memref<5x11x8x256xf32, #tpu.memory_space<vmem>>, vector<1x7x8x256xf32>
    %132 = vector.shape_cast %131 : vector<1x7x8x256xf32> to vector<7x8x256xf32>
    %c1_130 = arith.constant 1 : index
    %c3_131 = arith.constant 3 : index
    %c0_132 = arith.constant 0 : index
    %c0_133 = arith.constant 0 : index
    %133 = vector.load %arg1[%c1_130, %c3_131, %c0_132, %c0_133] : memref<5x5x8x256xf32, #tpu.memory_space<vmem>>, vector<1x1x8x256xf32>
    %134 = vector.shape_cast %133 : vector<1x1x8x256xf32> to vector<8x256xf32>
    %135 = vector.shape_cast %134 : vector<8x256xf32> to vector<1x8x256xf32>
    %136 = vector.broadcast %135 : vector<1x8x256xf32> to vector<7x8x256xf32>
    %137 = arith.mulf %132, %136 : vector<7x8x256xf32>
    %138 = arith.addf %130, %137 : vector<7x8x256xf32>
    %c3_134 = arith.constant 3 : index
    %c2_135 = arith.constant 2 : index
    %c0_136 = arith.constant 0 : index
    %c0_137 = arith.constant 0 : index
    %139 = vector.load %arg0[%c3_134, %c2_135, %c0_136, %c0_137] : memref<5x11x8x256xf32, #tpu.memory_space<vmem>>, vector<1x7x8x256xf32>
    %140 = vector.shape_cast %139 : vector<1x7x8x256xf32> to vector<7x8x256xf32>
    %c2_138 = arith.constant 2 : index
    %c3_139 = arith.constant 3 : index
    %c0_140 = arith.constant 0 : index
    %c0_141 = arith.constant 0 : index
    %141 = vector.load %arg1[%c2_138, %c3_139, %c0_140, %c0_141] : memref<5x5x8x256xf32, #tpu.memory_space<vmem>>, vector<1x1x8x256xf32>
    %142 = vector.shape_cast %141 : vector<1x1x8x256xf32> to vector<8x256xf32>
    %143 = vector.shape_cast %142 : vector<8x256xf32> to vector<1x8x256xf32>
    %144 = vector.broadcast %143 : vector<1x8x256xf32> to vector<7x8x256xf32>
    %145 = arith.mulf %140, %144 : vector<7x8x256xf32>
    %146 = arith.addf %138, %145 : vector<7x8x256xf32>
    %c3_142 = arith.constant 3 : index
    %c3_143 = arith.constant 3 : index
    %c0_144 = arith.constant 0 : index
    %c0_145 = arith.constant 0 : index
    %147 = vector.load %arg0[%c3_142, %c3_143, %c0_144, %c0_145] : memref<5x11x8x256xf32, #tpu.memory_space<vmem>>, vector<1x7x8x256xf32>
    %148 = vector.shape_cast %147 : vector<1x7x8x256xf32> to vector<7x8x256xf32>
    %c3_146 = arith.constant 3 : index
    %c3_147 = arith.constant 3 : index
    %c0_148 = arith.constant 0 : index
    %c0_149 = arith.constant 0 : index
    %149 = vector.load %arg1[%c3_146, %c3_147, %c0_148, %c0_149] : memref<5x5x8x256xf32, #tpu.memory_space<vmem>>, vector<1x1x8x256xf32>
    %150 = vector.shape_cast %149 : vector<1x1x8x256xf32> to vector<8x256xf32>
    %151 = vector.shape_cast %150 : vector<8x256xf32> to vector<1x8x256xf32>
    %152 = vector.broadcast %151 : vector<1x8x256xf32> to vector<7x8x256xf32>
    %153 = arith.mulf %148, %152 : vector<7x8x256xf32>
    %154 = arith.addf %146, %153 : vector<7x8x256xf32>
    %c3_150 = arith.constant 3 : index
    %c4_151 = arith.constant 4 : index
    %c0_152 = arith.constant 0 : index
    %c0_153 = arith.constant 0 : index
    %155 = vector.load %arg0[%c3_150, %c4_151, %c0_152, %c0_153] : memref<5x11x8x256xf32, #tpu.memory_space<vmem>>, vector<1x7x8x256xf32>
    %156 = vector.shape_cast %155 : vector<1x7x8x256xf32> to vector<7x8x256xf32>
    %c4_154 = arith.constant 4 : index
    %c3_155 = arith.constant 3 : index
    %c0_156 = arith.constant 0 : index
    %c0_157 = arith.constant 0 : index
    %157 = vector.load %arg1[%c4_154, %c3_155, %c0_156, %c0_157] : memref<5x5x8x256xf32, #tpu.memory_space<vmem>>, vector<1x1x8x256xf32>
    %158 = vector.shape_cast %157 : vector<1x1x8x256xf32> to vector<8x256xf32>
    %159 = vector.shape_cast %158 : vector<8x256xf32> to vector<1x8x256xf32>
    %160 = vector.broadcast %159 : vector<1x8x256xf32> to vector<7x8x256xf32>
    %161 = arith.mulf %156, %160 : vector<7x8x256xf32>
    %162 = arith.addf %154, %161 : vector<7x8x256xf32>
    %c4_158 = arith.constant 4 : index
    %c0_159 = arith.constant 0 : index
    %c0_160 = arith.constant 0 : index
    %c0_161 = arith.constant 0 : index
    %163 = vector.load %arg0[%c4_158, %c0_159, %c0_160, %c0_161] : memref<5x11x8x256xf32, #tpu.memory_space<vmem>>, vector<1x7x8x256xf32>
    %164 = vector.shape_cast %163 : vector<1x7x8x256xf32> to vector<7x8x256xf32>
    %c0_162 = arith.constant 0 : index
    %c4_163 = arith.constant 4 : index
    %c0_164 = arith.constant 0 : index
    %c0_165 = arith.constant 0 : index
    %165 = vector.load %arg1[%c0_162, %c4_163, %c0_164, %c0_165] : memref<5x5x8x256xf32, #tpu.memory_space<vmem>>, vector<1x1x8x256xf32>
    %166 = vector.shape_cast %165 : vector<1x1x8x256xf32> to vector<8x256xf32>
    %167 = vector.shape_cast %166 : vector<8x256xf32> to vector<1x8x256xf32>
    %168 = vector.broadcast %167 : vector<1x8x256xf32> to vector<7x8x256xf32>
    %169 = arith.mulf %164, %168 : vector<7x8x256xf32>
    %170 = arith.addf %162, %169 : vector<7x8x256xf32>
    %c4_166 = arith.constant 4 : index
    %c1_167 = arith.constant 1 : index
    %c0_168 = arith.constant 0 : index
    %c0_169 = arith.constant 0 : index
    %171 = vector.load %arg0[%c4_166, %c1_167, %c0_168, %c0_169] : memref<5x11x8x256xf32, #tpu.memory_space<vmem>>, vector<1x7x8x256xf32>
    %172 = vector.shape_cast %171 : vector<1x7x8x256xf32> to vector<7x8x256xf32>
    %c1_170 = arith.constant 1 : index
    %c4_171 = arith.constant 4 : index
    %c0_172 = arith.constant 0 : index
    %c0_173 = arith.constant 0 : index
    %173 = vector.load %arg1[%c1_170, %c4_171, %c0_172, %c0_173] : memref<5x5x8x256xf32, #tpu.memory_space<vmem>>, vector<1x1x8x256xf32>
    %174 = vector.shape_cast %173 : vector<1x1x8x256xf32> to vector<8x256xf32>
    %175 = vector.shape_cast %174 : vector<8x256xf32> to vector<1x8x256xf32>
    %176 = vector.broadcast %175 : vector<1x8x256xf32> to vector<7x8x256xf32>
    %177 = arith.mulf %172, %176 : vector<7x8x256xf32>
    %178 = arith.addf %170, %177 : vector<7x8x256xf32>
    %c4_174 = arith.constant 4 : index
    %c2_175 = arith.constant 2 : index
    %c0_176 = arith.constant 0 : index
    %c0_177 = arith.constant 0 : index
    %179 = vector.load %arg0[%c4_174, %c2_175, %c0_176, %c0_177] : memref<5x11x8x256xf32, #tpu.memory_space<vmem>>, vector<1x7x8x256xf32>
    %180 = vector.shape_cast %179 : vector<1x7x8x256xf32> to vector<7x8x256xf32>
    %c2_178 = arith.constant 2 : index
    %c4_179 = arith.constant 4 : index
    %c0_180 = arith.constant 0 : index
    %c0_181 = arith.constant 0 : index
    %181 = vector.load %arg1[%c2_178, %c4_179, %c0_180, %c0_181] : memref<5x5x8x256xf32, #tpu.memory_space<vmem>>, vector<1x1x8x256xf32>
    %182 = vector.shape_cast %181 : vector<1x1x8x256xf32> to vector<8x256xf32>
    %183 = vector.shape_cast %182 : vector<8x256xf32> to vector<1x8x256xf32>
    %184 = vector.broadcast %183 : vector<1x8x256xf32> to vector<7x8x256xf32>
    %185 = arith.mulf %180, %184 : vector<7x8x256xf32>
    %186 = arith.addf %178, %185 : vector<7x8x256xf32>
    %c4_182 = arith.constant 4 : index
    %c3_183 = arith.constant 3 : index
    %c0_184 = arith.constant 0 : index
    %c0_185 = arith.constant 0 : index
    %187 = vector.load %arg0[%c4_182, %c3_183, %c0_184, %c0_185] : memref<5x11x8x256xf32, #tpu.memory_space<vmem>>, vector<1x7x8x256xf32>
    %188 = vector.shape_cast %187 : vector<1x7x8x256xf32> to vector<7x8x256xf32>
    %c3_186 = arith.constant 3 : index
    %c4_187 = arith.constant 4 : index
    %c0_188 = arith.constant 0 : index
    %c0_189 = arith.constant 0 : index
    %189 = vector.load %arg1[%c3_186, %c4_187, %c0_188, %c0_189] : memref<5x5x8x256xf32, #tpu.memory_space<vmem>>, vector<1x1x8x256xf32>
    %190 = vector.shape_cast %189 : vector<1x1x8x256xf32> to vector<8x256xf32>
    %191 = vector.shape_cast %190 : vector<8x256xf32> to vector<1x8x256xf32>
    %192 = vector.broadcast %191 : vector<1x8x256xf32> to vector<7x8x256xf32>
    %193 = arith.mulf %188, %192 : vector<7x8x256xf32>
    %194 = arith.addf %186, %193 : vector<7x8x256xf32>
    %c4_190 = arith.constant 4 : index
    %c4_191 = arith.constant 4 : index
    %c0_192 = arith.constant 0 : index
    %c0_193 = arith.constant 0 : index
    %195 = vector.load %arg0[%c4_190, %c4_191, %c0_192, %c0_193] : memref<5x11x8x256xf32, #tpu.memory_space<vmem>>, vector<1x7x8x256xf32>
    %196 = vector.shape_cast %195 : vector<1x7x8x256xf32> to vector<7x8x256xf32>
    %c4_194 = arith.constant 4 : index
    %c4_195 = arith.constant 4 : index
    %c0_196 = arith.constant 0 : index
    %c0_197 = arith.constant 0 : index
    %197 = vector.load %arg1[%c4_194, %c4_195, %c0_196, %c0_197] : memref<5x5x8x256xf32, #tpu.memory_space<vmem>>, vector<1x1x8x256xf32>
    %198 = vector.shape_cast %197 : vector<1x1x8x256xf32> to vector<8x256xf32>
    %199 = vector.shape_cast %198 : vector<8x256xf32> to vector<1x8x256xf32>
    %200 = vector.broadcast %199 : vector<1x8x256xf32> to vector<7x8x256xf32>
    %201 = arith.mulf %196, %200 : vector<7x8x256xf32>
    %202 = arith.addf %194, %201 : vector<7x8x256xf32>
    %cst = arith.constant 0.000000e+00 : f32
    %203 = vector.broadcast %cst : f32 to vector<7x8x256xf32>
    %204 = arith.maximumf %202, %203 : vector<7x8x256xf32>
    %cst_198 = arith.constant 1.000000e+00 : f32
    %205 = vector.broadcast %cst_198 : f32 to vector<7x8x256xf32>
    %206 = arith.minimumf %204, %205 : vector<7x8x256xf32>
    %c0_199 = arith.constant 0 : index
    %c0_200 = arith.constant 0 : index
    %c0_201 = arith.constant 0 : index
    %207 = vector.load %arg3[%c0_199, %c0_200, %c0_201] : memref<7x8x256xf32, #tpu.memory_space<vmem>>, vector<7x8x256xf32>
    tpu.vector_store %arg3[%c0_199, %c0_200, %c0_201], %206 {strides = array<i32>} : memref<7x8x256xf32, #tpu.memory_space<vmem>>, vector<7x8x256xf32>,
    return
  }
}

</mosaic_0001>

<bundles_post_ra>
// kernel: _forward.1
= control target key start
LH: loop header
LB: loop body
LE: loop exit
PB: predicated region body
PF: predicated region fallthrough
CT: control target
= control target key end

     0   :  { %s2572_s0 = inlined_call_operand.vmem [shape: f32[5,11,8,256], index: 0, kind: input, shape index: {}]   ;;  %s2573_s1 = inlined_call_operand.vmem [shape: f32[5,5,8,256], index: 1, kind: input, shape index: {}]   ;;  %s2574_s2 = inlined_call_operand.vmem [shape: f32[1,8,256], index: 2, kind: input, shape index: {}]   ;;  %s2575_s3 = inlined_call_operand.vmem [shape: f32[7,8,256], index: 3, kind: output, shape index: {}]  }
   0x1   :  { %v16_v0 = vld [vmem:[%s2572_s0] sm:$0xff]  ;;  %v17_v1 = vld [vmem:[%s2572_s0 + $0x8] sm:$0xff]  ;;  %v18_v2 = vld [vmem:[%s2572_s0 + $0x10] sm:$0xff] }
   0x2   :  { %v19_v3 = vld [vmem:[%s2572_s0 + $0x18] sm:$0xff]  ;;  %v1629_v4 = vld [vmem:[%s2572_s0 + $0x20] sm:$0xff]  ;;  %v1634_v5 = vld [vmem:[%s2572_s0 + $0x28] sm:$0xff] }
   0x3   :  { %v30_v6 = vld [vmem:[%s2573_s1] sm:$0xff]  ;;  %v31_v7 = vld [vmem:[%s2573_s1 + $0x8] sm:$0xff]  ;;  %v1645_v8 = vld [vmem:[%s2572_s0 + $0x30] sm:$0xff] }
   0x4   :  { %v1650_v9 = vld [vmem:[%s2572_s0 + $0x38] sm:$0xff]  ;;  %v1655_v10 = vld [vmem:[%s2572_s0 + $0x40] sm:$0xff]  ;;  %v1660_v11 = vld [vmem:[%s2572_s0 + $0x48] sm:$0xff]  ;;  %v32_v16 = vmul.f32 %v30_v6, %v16_v0  ;;  %v33_v17 = vmul.f32 %v31_v7, %v17_v1  ;;  %v34_v18 = vmul.f32 %v30_v6, %v18_v2  ;;  %v35_v19 = vmul.f32 %v31_v7, %v19_v3 }
   0x5   :  { %v1665_v12 = vld [vmem:[%s2572_s0 + $0x50] sm:$0xff]  ;;  %v1670_v13 = vld [vmem:[%s2572_s0 + $0x58] sm:$0xff]  ;;  %v1675_v14 = vld [vmem:[%s2572_s0 + $0x60] sm:$0xff]  ;;  %v36_v22 = vmul.f32 %v30_v6, %v1629_v4  ;;  %v37_v23 = vmul.f32 %v31_v7, %v1634_v5  ;;  %v38_v24 = vmul.f32 %v30_v6, %v1645_v8  ;;  %v39_v25 = vmul.f32 %v31_v7, %v1650_v9 }
   0x6   :  { %v1680_v15 = vld [vmem:[%s2572_s0 + $0x68] sm:$0xff]  ;;  %v14_v20 = vld [vmem:[%s2574_s2] sm:$0xff]  ;;  %v40_v26 = vmul.f32 %v30_v6, %v1655_v10  ;;  %v41_v27 = vmul.f32 %v31_v7, %v1660_v11  ;;  %v42_v28 = vmul.f32 %v30_v6, %v1665_v12  ;;  %v43_v29 = vmul.f32 %v31_v7, %v1670_v13  ;;  %v1224_v36 = vld [vmem:[%s2573_s1 + $0x50] sm:$0xff] }
   0x7   :  { %v15_v21 = vld [vmem:[%s2574_s2 + $0x8] sm:$0xff]  ;;  %v44_v30 = vmul.f32 %v30_v6, %v1675_v14  ;;  %v45_v31 = vmul.f32 %v31_v7, %v1680_v15  ;;  %v46_v32 = vadd.f32 %v32_v16, %v14_v20  ;;  %v48_v34 = vadd.f32 %v34_v18, %v14_v20  ;;  %v1225_v37 = vld [vmem:[%s2573_s1 + $0x58] sm:$0xff]  ;;  %v1707_v46 = vld [vmem:[%s2572_s0 + $0x70] sm:$0xff] }
   0x8   :  { %v47_v33 = vadd.f32 %v33_v17, %v15_v21  ;;  %v49_v35 = vadd.f32 %v35_v19, %v15_v21  ;;  %v50_v38 = vadd.f32 %v36_v22, %v14_v20  ;;  %v51_v39 = vadd.f32 %v37_v23, %v15_v21  ;;  %v1712_v47 = vld [vmem:[%s2572_s0 + $0x78] sm:$0xff]  ;;  %v1240_v6 = vld [vmem:[%s2573_s1 + $0xa0] sm:$0xff]  ;;  %v1241_v7 = vld [vmem:[%s2573_s1 + $0xa8] sm:$0xff] }
   0x9   :  { %v52_v40 = vadd.f32 %v38_v24, %v14_v20  ;;  %v53_v41 = vadd.f32 %v39_v25, %v15_v21  ;;  %v54_v42 = vadd.f32 %v40_v26, %v14_v20  ;;  %v55_v43 = vadd.f32 %v41_v27, %v15_v21  ;;  %v1735_v24 = vld [vmem:[%s2572_s0 + $0x80] sm:$0xff]  ;;  %v1740_v25 = vld [vmem:[%s2572_s0 + $0x88] sm:$0xff] }
   0xa   :  { %v56_v44 = vadd.f32 %v42_v28, %v14_v20  ;;  %v57_v45 = vadd.f32 %v43_v29, %v15_v21  ;;  %v78_v48 = vmul.f32 %v1224_v36, %v18_v2  ;;  %v79_v49 = vmul.f32 %v1225_v37, %v19_v3 }
   0xb   :  { %v80_v50 = vmul.f32 %v1224_v36, %v1629_v4  ;;  %v81_v51 = vmul.f32 %v1225_v37, %v1634_v5  ;;  %v82_v52 = vmul.f32 %v1224_v36, %v1645_v8  ;;  %v83_v53 = vmul.f32 %v1225_v37, %v1650_v9 }
   0xc   :  { %v84_v54 = vmul.f32 %v1224_v36, %v1655_v10  ;;  %v85_v55 = vmul.f32 %v1225_v37, %v1660_v11  ;;  %v86_v56 = vmul.f32 %v1224_v36, %v1665_v12  ;;  %v87_v57 = vmul.f32 %v1225_v37, %v1670_v13 }
   0xd   :  { %v88_v58 = vmul.f32 %v1224_v36, %v1675_v14  ;;  %v89_v59 = vmul.f32 %v1225_v37, %v1680_v15  ;;  %v58_v60 = vadd.f32 %v44_v30, %v14_v20  ;;  %v59_v61 = vadd.f32 %v45_v31, %v15_v21 }
   0xe   :  { %v90_v62 = vmul.f32 %v1224_v36, %v1707_v46  ;;  %v91_v63 = vmul.f32 %v1225_v37, %v1712_v47  ;;  %v92_v0 = vadd.f32 %v78_v48, %v46_v32  ;;  %v93_v1 = vadd.f32 %v79_v49, %v47_v33 }
   0xf   :  { %v94_v2 = vadd.f32 %v80_v50, %v48_v34  ;;  %v95_v3 = vadd.f32 %v81_v51, %v49_v35  ;;  %v96_v16 = vadd.f32 %v82_v52, %v50_v38  ;;  %v97_v17 = vadd.f32 %v83_v53, %v51_v39 }
  0x10   :  { %v98_v18 = vadd.f32 %v84_v54, %v52_v40  ;;  %v99_v19 = vadd.f32 %v85_v55, %v53_v41  ;;  %v100_v20 = vadd.f32 %v86_v56, %v54_v42  ;;  %v101_v21 = vadd.f32 %v87_v57, %v55_v43  ;;  %v1254_v56 = vld [vmem:[%s2572_s0 + $0x90] sm:$0xff]  ;;  %v1255_v57 = vld [vmem:[%s2572_s0 + $0x98] sm:$0xff] }
  0x11   :  { %v102_v22 = vadd.f32 %v88_v58, %v56_v44  ;;  %v103_v23 = vadd.f32 %v89_v59, %v57_v45  ;;  %v124_v26 = vmul.f32 %v1240_v6, %v1629_v4  ;;  %v125_v27 = vmul.f32 %v1241_v7, %v1634_v5  ;;  %v1256_v44 = vld [vmem:[%s2573_s1 + $0xf0] sm:$0xff]  ;;  %v1257_v45 = vld [vmem:[%s2573_s1 + $0xf8] sm:$0xff] }
  0x12   :  { %v126_v28 = vmul.f32 %v1240_v6, %v1645_v8  ;;  %v127_v29 = vmul.f32 %v1241_v7, %v1650_v9  ;;  %v128_v30 = vmul.f32 %v1240_v6, %v1655_v10  ;;  %v129_v31 = vmul.f32 %v1241_v7, %v1660_v11 }
  0x13   :  { %v130_v32 = vmul.f32 %v1240_v6, %v1665_v12  ;;  %v131_v33 = vmul.f32 %v1241_v7, %v1670_v13  ;;  %v132_v34 = vmul.f32 %v1240_v6, %v1675_v14  ;;  %v133_v35 = vmul.f32 %v1241_v7, %v1680_v15 }
  0x14   :  { %v134_v4 = vmul.f32 %v1240_v6, %v1707_v46  ;;  %v135_v5 = vmul.f32 %v1241_v7, %v1712_v47  ;;  %v104_v36 = vadd.f32 %v90_v62, %v58_v60  ;;  %v105_v37 = vadd.f32 %v91_v63, %v59_v61 }
  0x15   :  { %v136_v38 = vmul.f32 %v1240_v6, %v1735_v24  ;;  %v137_v39 = vmul.f32 %v1241_v7, %v1740_v25  ;;  %v138_v40 = vadd.f32 %v124_v26, %v92_v0  ;;  %v139_v41 = vadd.f32 %v125_v27, %v93_v1 }
  0x16   :  { %v140_v42 = vadd.f32 %v126_v28, %v94_v2  ;;  %v141_v43 = vadd.f32 %v127_v29, %v95_v3  ;;  %v142_v48 = vadd.f32 %v128_v30, %v96_v16  ;;  %v143_v49 = vadd.f32 %v129_v31, %v97_v17 }
  0x17   :  { %v144_v50 = vadd.f32 %v130_v32, %v98_v18  ;;  %v145_v51 = vadd.f32 %v131_v33, %v99_v19  ;;  %v146_v52 = vadd.f32 %v132_v34, %v100_v20  ;;  %v147_v53 = vadd.f32 %v133_v35, %v101_v21  ;;  %v1270_v34 = vld [vmem:[%s2572_s0 + $0xa0] sm:$0xff]  ;;  %v1271_v35 = vld [vmem:[%s2572_s0 + $0xa8] sm:$0xff] }
  0x18   :  { %v148_v54 = vadd.f32 %v134_v4, %v102_v22  ;;  %v149_v55 = vadd.f32 %v135_v5, %v103_v23  ;;  %v170_v58 = vmul.f32 %v1256_v44, %v1645_v8  ;;  %v171_v59 = vmul.f32 %v1257_v45, %v1650_v9  ;;  %v1272_v22 = vld [vmem:[%s2573_s1 + $0x140] sm:$0xff]  ;;  %v1273_v23 = vld [vmem:[%s2573_s1 + $0x148] sm:$0xff] }
  0x19   :  { %v172_v60 = vmul.f32 %v1256_v44, %v1655_v10  ;;  %v173_v61 = vmul.f32 %v1257_v45, %v1660_v11  ;;  %v174_v62 = vmul.f32 %v1256_v44, %v1665_v12  ;;  %v175_v63 = vmul.f32 %v1257_v45, %v1670_v13 }
  0x1a   :  { %v176_v0 = vmul.f32 %v1256_v44, %v1675_v14  ;;  %v177_v1 = vmul.f32 %v1257_v45, %v1680_v15  ;;  %v178_v2 = vmul.f32 %v1256_v44, %v1707_v46  ;;  %v179_v3 = vmul.f32 %v1257_v45, %v1712_v47 }
  0x1b   :  { %v180_v8 = vmul.f32 %v1256_v44, %v1735_v24  ;;  %v181_v9 = vmul.f32 %v1257_v45, %v1740_v25  ;;  %v150_v6 = vadd.f32 %v136_v38, %v104_v36  ;;  %v151_v7 = vadd.f32 %v137_v39, %v105_v37 }
  0x1c   :  { %v182_v16 = vmul.f32 %v1256_v44, %v1254_v56  ;;  %v183_v17 = vmul.f32 %v1257_v45, %v1255_v57  ;;  %v184_v18 = vadd.f32 %v170_v58, %v138_v40  ;;  %v185_v19 = vadd.f32 %v171_v59, %v139_v41  ;;  %v1833_v58 = vld [vmem:[%s2572_s0 + $0xe0] sm:$0xff]  ;;  %v1838_v59 = vld [vmem:[%s2572_s0 + $0xe8] sm:$0xff] }
  0x1d   :  { %v186_v20 = vadd.f32 %v172_v60, %v140_v42  ;;  %v187_v21 = vadd.f32 %v173_v61, %v141_v43  ;;  %v188_v26 = vadd.f32 %v174_v62, %v142_v48  ;;  %v189_v27 = vadd.f32 %v175_v63, %v143_v49  ;;  %v1843_v60 = vld [vmem:[%s2572_s0 + $0xf0] sm:$0xff] }
  0x1e   :  { %v190_v28 = vadd.f32 %v176_v0, %v144_v50  ;;  %v191_v29 = vadd.f32 %v177_v1, %v145_v51  ;;  %v192_v30 = vadd.f32 %v178_v2, %v146_v52  ;;  %v193_v31 = vadd.f32 %v179_v3, %v147_v53  ;;  %v1822_v51 = vld [vmem:[%s2572_s0 + $0xd8] sm:$0xff]  ;;  %v1288_v52 = vld [vmem:[%s2573_s1 + $0x10] sm:$0xff]  ;;  %v1853_v2 = vld [vmem:[%s2572_s0 + $0x100] sm:$0xff] }
  0x1f   :  { %v194_v32 = vadd.f32 %v180_v8, %v148_v54  ;;  %v195_v33 = vadd.f32 %v181_v9, %v149_v55  ;;  %v216_v4 = vmul.f32 %v1272_v22, %v1655_v10  ;;  %v217_v5 = vmul.f32 %v1273_v23, %v1660_v11  ;;  %v1274_v11 = vld [vmem:[%s2572_s0 + $0xb0] sm:$0xff]  ;;  %v1289_v53 = vld [vmem:[%s2573_s1 + $0x18] sm:$0xff]  ;;  %v1858_v3 = vld [vmem:[%s2572_s0 + $0x108] sm:$0xff] }
  0x20   :  { %v218_v36 = vmul.f32 %v1272_v22, %v1665_v12  ;;  %v219_v37 = vmul.f32 %v1273_v23, %v1670_v13  ;;  %v220_v38 = vmul.f32 %v1272_v22, %v1675_v14  ;;  %v221_v39 = vmul.f32 %v1273_v23, %v1680_v15  ;;  %v1275_v12 = vld [vmem:[%s2572_s0 + $0xb8] sm:$0xff]  ;;  %v1863_v8 = vld [vmem:[%s2572_s0 + $0x110] sm:$0xff] }
  0x21   :  { %v222_v40 = vmul.f32 %v1272_v22, %v1707_v46  ;;  %v223_v41 = vmul.f32 %v1273_v23, %v1712_v47  ;;  %v224_v42 = vmul.f32 %v1272_v22, %v1735_v24  ;;  %v225_v43 = vmul.f32 %v1273_v23, %v1740_v25  ;;  %v1276_v47 = vld [vmem:[%s2572_s0 + $0xc0] sm:$0xff]  ;;  %v1277_v24 = vld [vmem:[%s2572_s0 + $0xc8] sm:$0xff]  ;;  %v1817_v25 = vld [vmem:[%s2572_s0 + $0xd0] sm:$0xff] }
  0x22   :  { %v226_v44 = vmul.f32 %v1272_v22, %v1254_v56  ;;  %v227_v10 = vmul.f32 %v1273_v23, %v1255_v57  ;;  %v196_v13 = vadd.f32 %v182_v16, %v150_v6  ;;  %v197_v14 = vadd.f32 %v183_v17, %v151_v7  ;;  %v1848_v1 = vld [vmem:[%s2572_s0 + $0xf8] sm:$0xff] }
  0x23   :  { %v228_v15 = vmul.f32 %v1272_v22, %v1270_v34  ;;  %v229_v46 = vmul.f32 %v1273_v23, %v1271_v35  ;;  %v230_v45 = vadd.f32 %v216_v4, %v184_v18  ;;  %v231_v48 = vadd.f32 %v217_v5, %v185_v19  ;;  %v1868_v9 = vld [vmem:[%s2572_s0 + $0x118] sm:$0xff]  ;;  %v1304_v4 = vld [vmem:[%s2573_s1 + $0x60] sm:$0xff]  ;;  %v1305_v5 = vld [vmem:[%s2573_s1 + $0x68] sm:$0xff] }
  0x24   :  { %v232_v49 = vadd.f32 %v218_v36, %v186_v20  ;;  %v233_v50 = vadd.f32 %v219_v37, %v187_v21  ;;  %v234_v54 = vadd.f32 %v220_v38, %v188_v26  ;;  %v235_v55 = vadd.f32 %v221_v39, %v189_v27 }
  0x25   :  { %v236_v56 = vadd.f32 %v222_v40, %v190_v28  ;;  %v237_v57 = vadd.f32 %v223_v41, %v191_v29  ;;  %v238_v61 = vadd.f32 %v224_v42, %v192_v30  ;;  %v239_v62 = vadd.f32 %v225_v43, %v193_v31 }
  0x26   :  { %v240_v63 = vadd.f32 %v226_v44, %v194_v32  ;;  %v241_v0 = vadd.f32 %v227_v10, %v195_v33  ;;  %v262_v6 = vmul.f32 %v1288_v52, %v1274_v11  ;;  %v263_v7 = vmul.f32 %v1289_v53, %v1275_v12  ;;  %v1889_v44 = vld [vmem:[%s2572_s0 + $0x120] sm:$0xff]  ;;  %v1894_v10 = vld [vmem:[%s2572_s0 + $0x128] sm:$0xff] }
  0x27   :  { %v264_v16 = vmul.f32 %v1288_v52, %v1276_v47  ;;  %v265_v17 = vmul.f32 %v1289_v53, %v1277_v24  ;;  %v266_v18 = vmul.f32 %v1288_v52, %v1817_v25  ;;  %v267_v19 = vmul.f32 %v1289_v53, %v1822_v51 }
  0x28   :  { %v268_v20 = vmul.f32 %v1288_v52, %v1833_v58  ;;  %v269_v21 = vmul.f32 %v1289_v53, %v1838_v59  ;;  %v270_v22 = vmul.f32 %v1288_v52, %v1843_v60  ;;  %v271_v23 = vmul.f32 %v1289_v53, %v1848_v1 }
  0x29   :  { %v272_v26 = vmul.f32 %v1288_v52, %v1853_v2  ;;  %v273_v27 = vmul.f32 %v1289_v53, %v1858_v3  ;;  %v242_v28 = vadd.f32 %v228_v15, %v196_v13  ;;  %v243_v29 = vadd.f32 %v229_v46, %v197_v14 }
  0x2a   :  { %v274_v30 = vmul.f32 %v1288_v52, %v1863_v8  ;;  %v275_v31 = vmul.f32 %v1289_v53, %v1868_v9  ;;  %v276_v32 = vadd.f32 %v262_v6, %v230_v45  ;;  %v277_v33 = vadd.f32 %v263_v7, %v231_v48 }
  0x2b   :  { %v278_v34 = vadd.f32 %v264_v16, %v232_v49  ;;  %v279_v35 = vadd.f32 %v265_v17, %v233_v50  ;;  %v280_v36 = vadd.f32 %v266_v18, %v234_v54  ;;  %v281_v37 = vadd.f32 %v267_v19, %v235_v55 }
  0x2c   :  { %v282_v38 = vadd.f32 %v268_v20, %v236_v56  ;;  %v283_v39 = vadd.f32 %v269_v21, %v237_v57  ;;  %v284_v40 = vadd.f32 %v270_v22, %v238_v61  ;;  %v285_v41 = vadd.f32 %v271_v23, %v239_v62  ;;  %v1917_v22 = vld [vmem:[%s2572_s0 + $0x130] sm:$0xff]  ;;  %v1922_v23 = vld [vmem:[%s2572_s0 + $0x138] sm:$0xff] }
  0x2d   :  { %v286_v42 = vadd.f32 %v272_v26, %v240_v63  ;;  %v287_v43 = vadd.f32 %v273_v27, %v241_v0  ;;  %v308_v11 = vmul.f32 %v1304_v4, %v1276_v47  ;;  %v309_v12 = vmul.f32 %v1305_v5, %v1277_v24  ;;  %v1320_v63 = vld [vmem:[%s2573_s1 + $0xb0] sm:$0xff]  ;;  %v1321_v0 = vld [vmem:[%s2573_s1 + $0xb8] sm:$0xff] }
  0x2e   :  { %v310_v13 = vmul.f32 %v1304_v4, %v1817_v25  ;;  %v311_v14 = vmul.f32 %v1305_v5, %v1822_v51  ;;  %v312_v15 = vmul.f32 %v1304_v4, %v1833_v58  ;;  %v313_v46 = vmul.f32 %v1305_v5, %v1838_v59 }
  0x2f   :  { %v314_v45 = vmul.f32 %v1304_v4, %v1843_v60  ;;  %v315_v48 = vmul.f32 %v1305_v5, %v1848_v1  ;;  %v316_v49 = vmul.f32 %v1304_v4, %v1853_v2  ;;  %v317_v50 = vmul.f32 %v1305_v5, %v1858_v3 }
  0x30   :  { %v318_v52 = vmul.f32 %v1304_v4, %v1863_v8  ;;  %v319_v47 = vmul.f32 %v1305_v5, %v1868_v9  ;;  %v288_v24 = vadd.f32 %v274_v30, %v242_v28  ;;  %v289_v53 = vadd.f32 %v275_v31, %v243_v29 }
  0x31   :  { %v320_v54 = vmul.f32 %v1304_v4, %v1889_v44  ;;  %v321_v55 = vmul.f32 %v1305_v5, %v1894_v10  ;;  %v322_v56 = vadd.f32 %v308_v11, %v276_v32  ;;  %v323_v57 = vadd.f32 %v309_v12, %v277_v33 }
  0x32   :  { %v324_v61 = vadd.f32 %v310_v13, %v278_v34  ;;  %v325_v62 = vadd.f32 %v311_v14, %v279_v35  ;;  %v326_v6 = vadd.f32 %v312_v15, %v280_v36  ;;  %v327_v7 = vadd.f32 %v313_v46, %v281_v37 }
  0x33   :  { %v328_v16 = vadd.f32 %v314_v45, %v282_v38  ;;  %v329_v17 = vadd.f32 %v315_v48, %v283_v39  ;;  %v330_v18 = vadd.f32 %v316_v49, %v284_v40  ;;  %v331_v19 = vadd.f32 %v317_v50, %v285_v41  ;;  %v1334_v49 = vld [vmem:[%s2572_s0 + $0x140] sm:$0xff]  ;;  %v1335_v50 = vld [vmem:[%s2572_s0 + $0x148] sm:$0xff] }
  0x34   :  { %v332_v20 = vadd.f32 %v318_v52, %v286_v42  ;;  %v333_v21 = vadd.f32 %v319_v47, %v287_v43  ;;  %v354_v26 = vmul.f32 %v1320_v63, %v1817_v25  ;;  %v355_v27 = vmul.f32 %v1321_v0, %v1822_v51  ;;  %v1336_v42 = vld [vmem:[%s2573_s1 + $0x100] sm:$0xff]  ;;  %v1337_v43 = vld [vmem:[%s2573_s1 + $0x108] sm:$0xff] }
  0x35   :  { %v356_v28 = vmul.f32 %v1320_v63, %v1833_v58  ;;  %v357_v29 = vmul.f32 %v1321_v0, %v1838_v59  ;;  %v358_v30 = vmul.f32 %v1320_v63, %v1843_v60  ;;  %v359_v31 = vmul.f32 %v1321_v0, %v1848_v1 }
  0x36   :  { %v360_v32 = vmul.f32 %v1320_v63, %v1853_v2  ;;  %v361_v33 = vmul.f32 %v1321_v0, %v1858_v3  ;;  %v362_v34 = vmul.f32 %v1320_v63, %v1863_v8  ;;  %v363_v35 = vmul.f32 %v1321_v0, %v1868_v9 }
  0x37   :  { %v364_v25 = vmul.f32 %v1320_v63, %v1889_v44  ;;  %v365_v51 = vmul.f32 %v1321_v0, %v1894_v10  ;;  %v334_v4 = vadd.f32 %v320_v54, %v288_v24  ;;  %v335_v5 = vadd.f32 %v321_v55, %v289_v53 }
  0x38   :  { %v366_v36 = vmul.f32 %v1320_v63, %v1917_v22  ;;  %v367_v37 = vmul.f32 %v1321_v0, %v1922_v23  ;;  %v368_v38 = vadd.f32 %v354_v26, %v322_v56  ;;  %v369_v39 = vadd.f32 %v355_v27, %v323_v57 }
  0x39   :  { %v370_v40 = vadd.f32 %v356_v28, %v324_v61  ;;  %v371_v41 = vadd.f32 %v357_v29, %v325_v62  ;;  %v372_v11 = vadd.f32 %v358_v30, %v326_v6  ;;  %v373_v12 = vadd.f32 %v359_v31, %v327_v7 }
  0x3a   :  { %v374_v13 = vadd.f32 %v360_v32, %v328_v16  ;;  %v375_v14 = vadd.f32 %v361_v33, %v329_v17  ;;  %v376_v15 = vadd.f32 %v362_v34, %v330_v18  ;;  %v377_v46 = vadd.f32 %v363_v35, %v331_v19  ;;  %v1350_v34 = vld [vmem:[%s2572_s0 + $0x150] sm:$0xff]  ;;  %v1351_v35 = vld [vmem:[%s2572_s0 + $0x158] sm:$0xff] }
  0x3b   :  { %v378_v45 = vadd.f32 %v364_v25, %v332_v20  ;;  %v379_v48 = vadd.f32 %v365_v51, %v333_v21  ;;  %v400_v52 = vmul.f32 %v1336_v42, %v1833_v58  ;;  %v401_v47 = vmul.f32 %v1337_v43, %v1838_v59  ;;  %v1352_v20 = vld [vmem:[%s2573_s1 + $0x150] sm:$0xff]  ;;  %v1353_v21 = vld [vmem:[%s2573_s1 + $0x158] sm:$0xff] }
  0x3c   :  { %v402_v24 = vmul.f32 %v1336_v42, %v1843_v60  ;;  %v403_v53 = vmul.f32 %v1337_v43, %v1848_v1  ;;  %v404_v54 = vmul.f32 %v1336_v42, %v1853_v2  ;;  %v405_v55 = vmul.f32 %v1337_v43, %v1858_v3 }
  0x3d   :  { %v406_v56 = vmul.f32 %v1336_v42, %v1863_v8  ;;  %v407_v57 = vmul.f32 %v1337_v43, %v1868_v9  ;;  %v408_v61 = vmul.f32 %v1336_v42, %v1889_v44  ;;  %v409_v62 = vmul.f32 %v1337_v43, %v1894_v10 }
  0x3e   :  { %v410_v58 = vmul.f32 %v1336_v42, %v1917_v22  ;;  %v411_v59 = vmul.f32 %v1337_v43, %v1922_v23  ;;  %v380_v63 = vadd.f32 %v366_v36, %v334_v4  ;;  %v381_v0 = vadd.f32 %v367_v37, %v335_v5 }
  0x3f   :  { %v412_v6 = vmul.f32 %v1336_v42, %v1334_v49  ;;  %v413_v7 = vmul.f32 %v1337_v43, %v1335_v50  ;;  %v414_v16 = vadd.f32 %v400_v52, %v368_v38  ;;  %v415_v17 = vadd.f32 %v401_v47, %v369_v39  ;;  %v2015_v52 = vld [vmem:[%s2572_s0 + $0x190] sm:$0xff]  ;;  %v2020_v47 = vld [vmem:[%s2572_s0 + $0x198] sm:$0xff] }
  0x40   :  { %v416_v18 = vadd.f32 %v402_v24, %v370_v40  ;;  %v417_v19 = vadd.f32 %v403_v53, %v371_v41  ;;  %v418_v26 = vadd.f32 %v404_v54, %v372_v11  ;;  %v419_v27 = vadd.f32 %v405_v55, %v373_v12  ;;  %v2025_v24 = vld [vmem:[%s2572_s0 + $0x1a0] sm:$0xff] }
  0x41   :  { %v420_v28 = vadd.f32 %v406_v56, %v374_v13  ;;  %v421_v29 = vadd.f32 %v407_v57, %v375_v14  ;;  %v422_v30 = vadd.f32 %v408_v61, %v376_v15  ;;  %v423_v31 = vadd.f32 %v409_v62, %v377_v46  ;;  %v2004_v14 = vld [vmem:[%s2572_s0 + $0x188] sm:$0xff]  ;;  %v1368_v15 = vld [vmem:[%s2573_s1 + $0x20] sm:$0xff]  ;;  %v2035_v61 = vld [vmem:[%s2572_s0 + $0x1b0] sm:$0xff] }
  0x42   :  { %v424_v32 = vadd.f32 %v410_v58, %v378_v45  ;;  %v425_v33 = vadd.f32 %v411_v59, %v379_v48  ;;  %v446_v25 = vmul.f32 %v1352_v20, %v1843_v60  ;;  %v447_v51 = vmul.f32 %v1353_v21, %v1848_v1  ;;  %v1354_v1 = vld [vmem:[%s2572_s0 + $0x160] sm:$0xff]  ;;  %v1369_v46 = vld [vmem:[%s2573_s1 + $0x28] sm:$0xff]  ;;  %v2040_v62 = vld [vmem:[%s2572_s0 + $0x1b8] sm:$0xff] }
  0x43   :  { %v448_v4 = vmul.f32 %v1352_v20, %v1853_v2  ;;  %v449_v5 = vmul.f32 %v1353_v21, %v1858_v3  ;;  %v450_v36 = vmul.f32 %v1352_v20, %v1863_v8  ;;  %v451_v37 = vmul.f32 %v1353_v21, %v1868_v9  ;;  %v1355_v2 = vld [vmem:[%s2572_s0 + $0x168] sm:$0xff]  ;;  %v2045_v58 = vld [vmem:[%s2572_s0 + $0x1c0] sm:$0xff] }
  0x44   :  { %v452_v38 = vmul.f32 %v1352_v20, %v1889_v44  ;;  %v453_v39 = vmul.f32 %v1353_v21, %v1894_v10  ;;  %v454_v40 = vmul.f32 %v1352_v20, %v1917_v22  ;;  %v455_v41 = vmul.f32 %v1353_v21, %v1922_v23  ;;  %v1356_v10 = vld [vmem:[%s2572_s0 + $0x170] sm:$0xff]  ;;  %v1357_v22 = vld [vmem:[%s2572_s0 + $0x178] sm:$0xff]  ;;  %v1999_v23 = vld [vmem:[%s2572_s0 + $0x180] sm:$0xff] }
  0x45   :  { %v456_v42 = vmul.f32 %v1352_v20, %v1334_v49  ;;  %v457_v60 = vmul.f32 %v1353_v21, %v1335_v50  ;;  %v426_v3 = vadd.f32 %v412_v6, %v380_v63  ;;  %v427_v8 = vadd.f32 %v413_v7, %v381_v0  ;;  %v2030_v57 = vld [vmem:[%s2572_s0 + $0x1a8] sm:$0xff] }
  0x46   :  { %v458_v9 = vmul.f32 %v1352_v20, %v1350_v34  ;;  %v459_v44 = vmul.f32 %v1353_v21, %v1351_v35  ;;  %v460_v43 = vadd.f32 %v446_v25, %v414_v16  ;;  %v461_v11 = vadd.f32 %v447_v51, %v415_v17  ;;  %v2050_v59 = vld [vmem:[%s2572_s0 + $0x1c8] sm:$0xff]  ;;  %v1384_v25 = vld [vmem:[%s2573_s1 + $0x70] sm:$0xff]  ;;  %v1385_v51 = vld [vmem:[%s2573_s1 + $0x78] sm:$0xff] }
  0x47   :  { %v462_v12 = vadd.f32 %v448_v4, %v416_v18  ;;  %v463_v13 = vadd.f32 %v449_v5, %v417_v19  ;;  %v464_v45 = vadd.f32 %v450_v36, %v418_v26  ;;  %v465_v48 = vadd.f32 %v451_v37, %v419_v27 }
  0x48   :  { %v466_v49 = vadd.f32 %v452_v38, %v420_v28  ;;  %v467_v50 = vadd.f32 %v453_v39, %v421_v29  ;;  %v468_v53 = vadd.f32 %v454_v40, %v422_v30  ;;  %v469_v54 = vadd.f32 %v455_v41, %v423_v31 }
  0x49   :  { %v470_v55 = vadd.f32 %v456_v42, %v424_v32  ;;  %v471_v56 = vadd.f32 %v457_v60, %v425_v33  ;;  %v492_v63 = vmul.f32 %v1368_v15, %v1354_v1  ;;  %v493_v0 = vmul.f32 %v1369_v46, %v1355_v2  ;;  %v2071_v42 = vld [vmem:[%s2572_s0 + $0x1d0] sm:$0xff]  ;;  %v2076_v60 = vld [vmem:[%s2572_s0 + $0x1d8] sm:$0xff] }
  0x4a   :  { %v494_v6 = vmul.f32 %v1368_v15, %v1356_v10  ;;  %v495_v7 = vmul.f32 %v1369_v46, %v1357_v22  ;;  %v496_v16 = vmul.f32 %v1368_v15, %v1999_v23  ;;  %v497_v17 = vmul.f32 %v1369_v46, %v2004_v14 }
  0x4b   :  { %v498_v18 = vmul.f32 %v1368_v15, %v2015_v52  ;;  %v499_v19 = vmul.f32 %v1369_v46, %v2020_v47  ;;  %v500_v20 = vmul.f32 %v1368_v15, %v2025_v24  ;;  %v501_v21 = vmul.f32 %v1369_v46, %v2030_v57 }
  0x4c   :  { %v502_v26 = vmul.f32 %v1368_v15, %v2035_v61  ;;  %v503_v27 = vmul.f32 %v1369_v46, %v2040_v62  ;;  %v472_v28 = vadd.f32 %v458_v9, %v426_v3  ;;  %v473_v29 = vadd.f32 %v459_v44, %v427_v8 }
  0x4d   :  { %v504_v30 = vmul.f32 %v1368_v15, %v2045_v58  ;;  %v505_v31 = vmul.f32 %v1369_v46, %v2050_v59  ;;  %v506_v32 = vadd.f32 %v492_v63, %v460_v43  ;;  %v507_v33 = vadd.f32 %v493_v0, %v461_v11 }
  0x4e   :  { %v508_v34 = vadd.f32 %v494_v6, %v462_v12  ;;  %v509_v35 = vadd.f32 %v495_v7, %v463_v13  ;;  %v510_v4 = vadd.f32 %v496_v16, %v464_v45  ;;  %v511_v5 = vadd.f32 %v497_v17, %v465_v48 }
  0x4f   :  { %v512_v36 = vadd.f32 %v498_v18, %v466_v49  ;;  %v513_v37 = vadd.f32 %v499_v19, %v467_v50  ;;  %v514_v38 = vadd.f32 %v500_v20, %v468_v53  ;;  %v515_v39 = vadd.f32 %v501_v21, %v469_v54  ;;  %v2099_v20 = vld [vmem:[%s2572_s0 + $0x1e0] sm:$0xff]  ;;  %v2104_v21 = vld [vmem:[%s2572_s0 + $0x1e8] sm:$0xff] }
  0x50   :  { %v516_v40 = vadd.f32 %v502_v26, %v470_v55  ;;  %v517_v41 = vadd.f32 %v503_v27, %v471_v56  ;;  %v538_v1 = vmul.f32 %v1384_v25, %v1356_v10  ;;  %v539_v2 = vmul.f32 %v1385_v51, %v1357_v22  ;;  %v1400_v55 = vld [vmem:[%s2573_s1 + $0xc0] sm:$0xff]  ;;  %v1401_v56 = vld [vmem:[%s2573_s1 + $0xc8] sm:$0xff] }
  0x51   :  { %v540_v3 = vmul.f32 %v1384_v25, %v1999_v23  ;;  %v541_v8 = vmul.f32 %v1385_v51, %v2004_v14  ;;  %v542_v9 = vmul.f32 %v1384_v25, %v2015_v52  ;;  %v543_v44 = vmul.f32 %v1385_v51, %v2020_v47 }
  0x52   :  { %v544_v43 = vmul.f32 %v1384_v25, %v2025_v24  ;;  %v545_v11 = vmul.f32 %v1385_v51, %v2030_v57  ;;  %v546_v12 = vmul.f32 %v1384_v25, %v2035_v61  ;;  %v547_v13 = vmul.f32 %v1385_v51, %v2040_v62 }
  0x53   :  { %v548_v15 = vmul.f32 %v1384_v25, %v2045_v58  ;;  %v549_v10 = vmul.f32 %v1385_v51, %v2050_v59  ;;  %v518_v22 = vadd.f32 %v504_v30, %v472_v28  ;;  %v519_v46 = vadd.f32 %v505_v31, %v473_v29 }
  0x54   :  { %v550_v45 = vmul.f32 %v1384_v25, %v2071_v42  ;;  %v551_v48 = vmul.f32 %v1385_v51, %v2076_v60  ;;  %v552_v49 = vadd.f32 %v538_v1, %v506_v32  ;;  %v553_v50 = vadd.f32 %v539_v2, %v507_v33 }
  0x55   :  { %v554_v53 = vadd.f32 %v540_v3, %v508_v34  ;;  %v555_v54 = vadd.f32 %v541_v8, %v509_v35  ;;  %v556_v63 = vadd.f32 %v542_v9, %v510_v4  ;;  %v557_v0 = vadd.f32 %v543_v44, %v511_v5 }
  0x56   :  { %v558_v6 = vadd.f32 %v544_v43, %v512_v36  ;;  %v559_v7 = vadd.f32 %v545_v11, %v513_v37  ;;  %v560_v16 = vadd.f32 %v546_v12, %v514_v38  ;;  %v561_v17 = vadd.f32 %v547_v13, %v515_v39  ;;  %v1414_v12 = vld [vmem:[%s2572_s0 + $0x1f0] sm:$0xff]  ;;  %v1415_v13 = vld [vmem:[%s2572_s0 + $0x1f8] sm:$0xff] }
  0x57   :  { %v562_v18 = vadd.f32 %v548_v15, %v516_v40  ;;  %v563_v19 = vadd.f32 %v549_v10, %v517_v41  ;;  %v584_v26 = vmul.f32 %v1400_v55, %v1999_v23  ;;  %v585_v27 = vmul.f32 %v1401_v56, %v2004_v14  ;;  %v1416_v40 = vld [vmem:[%s2573_s1 + $0x110] sm:$0xff]  ;;  %v1417_v41 = vld [vmem:[%s2573_s1 + $0x118] sm:$0xff] }
  0x58   :  { %v586_v28 = vmul.f32 %v1400_v55, %v2015_v52  ;;  %v587_v29 = vmul.f32 %v1401_v56, %v2020_v47  ;;  %v588_v30 = vmul.f32 %v1400_v55, %v2025_v24  ;;  %v589_v31 = vmul.f32 %v1401_v56, %v2030_v57 }
  0x59   :  { %v590_v32 = vmul.f32 %v1400_v55, %v2035_v61  ;;  %v591_v33 = vmul.f32 %v1401_v56, %v2040_v62  ;;  %v592_v34 = vmul.f32 %v1400_v55, %v2045_v58  ;;  %v593_v35 = vmul.f32 %v1401_v56, %v2050_v59 }
  0x5a   :  { %v594_v23 = vmul.f32 %v1400_v55, %v2071_v42  ;;  %v595_v14 = vmul.f32 %v1401_v56, %v2076_v60  ;;  %v564_v25 = vadd.f32 %v550_v45, %v518_v22  ;;  %v565_v51 = vadd.f32 %v551_v48, %v519_v46 }
  0x5b   :  { %v596_v4 = vmul.f32 %v1400_v55, %v2099_v20  ;;  %v597_v5 = vmul.f32 %v1401_v56, %v2104_v21  ;;  %v598_v36 = vadd.f32 %v584_v26, %v552_v49  ;;  %v599_v37 = vadd.f32 %v585_v27, %v553_v50 }
  0x5c   :  { %v600_v38 = vadd.f32 %v586_v28, %v554_v53  ;;  %v601_v39 = vadd.f32 %v587_v29, %v555_v54  ;;  %v602_v1 = vadd.f32 %v588_v30, %v556_v63  ;;  %v603_v2 = vadd.f32 %v589_v31, %v557_v0 }
  0x5d   :  { %v604_v3 = vadd.f32 %v590_v32, %v558_v6  ;;  %v605_v8 = vadd.f32 %v591_v33, %v559_v7  ;;  %v606_v9 = vadd.f32 %v592_v34, %v560_v16  ;;  %v607_v44 = vadd.f32 %v593_v35, %v561_v17  ;;  %v1430_v34 = vld [vmem:[%s2572_s0 + $0x200] sm:$0xff]  ;;  %v1431_v35 = vld [vmem:[%s2572_s0 + $0x208] sm:$0xff] }
  0x5e   :  { %v608_v43 = vadd.f32 %v594_v23, %v562_v18  ;;  %v609_v11 = vadd.f32 %v595_v14, %v563_v19  ;;  %v630_v15 = vmul.f32 %v1416_v40, %v2015_v52  ;;  %v631_v10 = vmul.f32 %v1417_v41, %v2020_v47  ;;  %v1432_v18 = vld [vmem:[%s2573_s1 + $0x160] sm:$0xff]  ;;  %v1433_v19 = vld [vmem:[%s2573_s1 + $0x168] sm:$0xff] }
  0x5f   :  { %v632_v22 = vmul.f32 %v1416_v40, %v2025_v24  ;;  %v633_v46 = vmul.f32 %v1417_v41, %v2030_v57  ;;  %v634_v45 = vmul.f32 %v1416_v40, %v2035_v61  ;;  %v635_v48 = vmul.f32 %v1417_v41, %v2040_v62 }
  0x60   :  { %v636_v49 = vmul.f32 %v1416_v40, %v2045_v58  ;;  %v637_v50 = vmul.f32 %v1417_v41, %v2050_v59  ;;  %v638_v53 = vmul.f32 %v1416_v40, %v2071_v42  ;;  %v639_v54 = vmul.f32 %v1417_v41, %v2076_v60 }
  0x61   :  { %v640_v52 = vmul.f32 %v1416_v40, %v2099_v20  ;;  %v641_v47 = vmul.f32 %v1417_v41, %v2104_v21  ;;  %v610_v55 = vadd.f32 %v596_v4, %v564_v25  ;;  %v611_v56 = vadd.f32 %v597_v5, %v565_v51 }
  0x62   :  { %v642_v63 = vmul.f32 %v1416_v40, %v1414_v12  ;;  %v643_v0 = vmul.f32 %v1417_v41, %v1415_v13  ;;  %v644_v6 = vadd.f32 %v630_v15, %v598_v36  ;;  %v645_v7 = vadd.f32 %v631_v10, %v599_v37  ;;  %v2197_v15 = vld [vmem:[%s2572_s0 + $0x240] sm:$0xff]  ;;  %v2202_v10 = vld [vmem:[%s2572_s0 + $0x248] sm:$0xff] }
  0x63   :  { %v646_v16 = vadd.f32 %v632_v22, %v600_v38  ;;  %v647_v17 = vadd.f32 %v633_v46, %v601_v39  ;;  %v648_v26 = vadd.f32 %v634_v45, %v602_v1  ;;  %v649_v27 = vadd.f32 %v635_v48, %v603_v2  ;;  %v2207_v22 = vld [vmem:[%s2572_s0 + $0x250] sm:$0xff] }
  0x64   :  { %v650_v28 = vadd.f32 %v636_v49, %v604_v3  ;;  %v651_v29 = vadd.f32 %v637_v50, %v605_v8  ;;  %v652_v30 = vadd.f32 %v638_v53, %v606_v9  ;;  %v653_v31 = vadd.f32 %v639_v54, %v607_v44  ;;  %v2186_v8 = vld [vmem:[%s2572_s0 + $0x238] sm:$0xff]  ;;  %v1448_v9 = vld [vmem:[%s2573_s1 + $0x30] sm:$0xff]  ;;  %v2217_v53 = vld [vmem:[%s2572_s0 + $0x260] sm:$0xff] }
  0x65   :  { %v654_v32 = vadd.f32 %v640_v52, %v608_v43  ;;  %v655_v33 = vadd.f32 %v641_v47, %v609_v11  ;;  %v676_v23 = vmul.f32 %v1432_v18, %v2025_v24  ;;  %v677_v14 = vmul.f32 %v1433_v19, %v2030_v57  ;;  %v1434_v57 = vld [vmem:[%s2572_s0 + $0x210] sm:$0xff]  ;;  %v1449_v44 = vld [vmem:[%s2573_s1 + $0x38] sm:$0xff]  ;;  %v2222_v54 = vld [vmem:[%s2572_s0 + $0x268] sm:$0xff] }
  0x66   :  { %v678_v25 = vmul.f32 %v1432_v18, %v2035_v61  ;;  %v679_v51 = vmul.f32 %v1433_v19, %v2040_v62  ;;  %v680_v4 = vmul.f32 %v1432_v18, %v2045_v58  ;;  %v681_v5 = vmul.f32 %v1433_v19, %v2050_v59  ;;  %v1435_v61 = vld [vmem:[%s2572_s0 + $0x218] sm:$0xff]  ;;  %v2227_v52 = vld [vmem:[%s2572_s0 + $0x270] sm:$0xff] }
  0x67   :  { %v682_v36 = vmul.f32 %v1432_v18, %v2071_v42  ;;  %v683_v37 = vmul.f32 %v1433_v19, %v2076_v60  ;;  %v684_v38 = vmul.f32 %v1432_v18, %v2099_v20  ;;  %v685_v39 = vmul.f32 %v1433_v19, %v2104_v21  ;;  %v1436_v60 = vld [vmem:[%s2572_s0 + $0x220] sm:$0xff]  ;;  %v1437_v20 = vld [vmem:[%s2572_s0 + $0x228] sm:$0xff]  ;;  %v2181_v21 = vld [vmem:[%s2572_s0 + $0x230] sm:$0xff] }
  0x68   :  { %v686_v40 = vmul.f32 %v1432_v18, %v1414_v12  ;;  %v687_v24 = vmul.f32 %v1433_v19, %v1415_v13  ;;  %v656_v62 = vadd.f32 %v642_v63, %v610_v55  ;;  %v657_v58 = vadd.f32 %v643_v0, %v611_v56  ;;  %v2212_v50 = vld [vmem:[%s2572_s0 + $0x258] sm:$0xff] }
  0x69   :  { %v688_v59 = vmul.f32 %v1432_v18, %v1430_v34  ;;  %v689_v42 = vmul.f32 %v1433_v19, %v1431_v35  ;;  %v690_v41 = vadd.f32 %v676_v23, %v644_v6  ;;  %v691_v1 = vadd.f32 %v677_v14, %v645_v7  ;;  %v2232_v47 = vld [vmem:[%s2572_s0 + $0x278] sm:$0xff]  ;;  %v1464_v23 = vld [vmem:[%s2573_s1 + $0x80] sm:$0xff]  ;;  %v1465_v14 = vld [vmem:[%s2573_s1 + $0x88] sm:$0xff] }
  0x6a   :  { %v692_v2 = vadd.f32 %v678_v25, %v646_v16  ;;  %v693_v3 = vadd.f32 %v679_v51, %v647_v17  ;;  %v694_v43 = vadd.f32 %v680_v4, %v648_v26  ;;  %v695_v11 = vadd.f32 %v681_v5, %v649_v27 }
  0x6b   :  { %v696_v12 = vadd.f32 %v682_v36, %v650_v28  ;;  %v697_v13 = vadd.f32 %v683_v37, %v651_v29  ;;  %v698_v46 = vadd.f32 %v684_v38, %v652_v30  ;;  %v699_v45 = vadd.f32 %v685_v39, %v653_v31 }
  0x6c   :  { %v700_v48 = vadd.f32 %v686_v40, %v654_v32  ;;  %v701_v49 = vadd.f32 %v687_v24, %v655_v33  ;;  %v722_v55 = vmul.f32 %v1448_v9, %v1434_v57  ;;  %v723_v56 = vmul.f32 %v1449_v44, %v1435_v61  ;;  %v2253_v40 = vld [vmem:[%s2572_s0 + $0x280] sm:$0xff]  ;;  %v2258_v24 = vld [vmem:[%s2572_s0 + $0x288] sm:$0xff] }
  0x6d   :  { %v724_v63 = vmul.f32 %v1448_v9, %v1436_v60  ;;  %v725_v0 = vmul.f32 %v1449_v44, %v1437_v20  ;;  %v726_v6 = vmul.f32 %v1448_v9, %v2181_v21  ;;  %v727_v7 = vmul.f32 %v1449_v44, %v2186_v8 }
  0x6e   :  { %v728_v16 = vmul.f32 %v1448_v9, %v2197_v15  ;;  %v729_v17 = vmul.f32 %v1449_v44, %v2202_v10  ;;  %v730_v18 = vmul.f32 %v1448_v9, %v2207_v22  ;;  %v731_v19 = vmul.f32 %v1449_v44, %v2212_v50 }
  0x6f   :  { %v732_v26 = vmul.f32 %v1448_v9, %v2217_v53  ;;  %v733_v27 = vmul.f32 %v1449_v44, %v2222_v54  ;;  %v702_v28 = vadd.f32 %v688_v59, %v656_v62  ;;  %v703_v29 = vadd.f32 %v689_v42, %v657_v58 }
  0x70   :  { %v734_v30 = vmul.f32 %v1448_v9, %v2227_v52  ;;  %v735_v31 = vmul.f32 %v1449_v44, %v2232_v47  ;;  %v736_v32 = vadd.f32 %v722_v55, %v690_v41  ;;  %v737_v33 = vadd.f32 %v723_v56, %v691_v1 }
  0x71   :  { %v738_v34 = vadd.f32 %v724_v63, %v692_v2  ;;  %v739_v35 = vadd.f32 %v725_v0, %v693_v3  ;;  %v740_v25 = vadd.f32 %v726_v6, %v694_v43  ;;  %v741_v51 = vadd.f32 %v727_v7, %v695_v11 }
  0x72   :  { %v742_v4 = vadd.f32 %v728_v16, %v696_v12  ;;  %v743_v5 = vadd.f32 %v729_v17, %v697_v13  ;;  %v744_v36 = vadd.f32 %v730_v18, %v698_v46  ;;  %v745_v37 = vadd.f32 %v731_v19, %v699_v45  ;;  %v2281_v18 = vld [vmem:[%s2572_s0 + $0x290] sm:$0xff]  ;;  %v2286_v19 = vld [vmem:[%s2572_s0 + $0x298] sm:$0xff] }
  0x73   :  { %v746_v38 = vadd.f32 %v732_v26, %v700_v48  ;;  %v747_v39 = vadd.f32 %v733_v27, %v701_v49  ;;  %v768_v57 = vmul.f32 %v1464_v23, %v1436_v60  ;;  %v769_v61 = vmul.f32 %v1465_v14, %v1437_v20  ;;  %v1480_v48 = vld [vmem:[%s2573_s1 + $0xd0] sm:$0xff]  ;;  %v1481_v49 = vld [vmem:[%s2573_s1 + $0xd8] sm:$0xff] }
  0x74   :  { %v770_v62 = vmul.f32 %v1464_v23, %v2181_v21  ;;  %v771_v58 = vmul.f32 %v1465_v14, %v2186_v8  ;;  %v772_v59 = vmul.f32 %v1464_v23, %v2197_v15  ;;  %v773_v42 = vmul.f32 %v1465_v14, %v2202_v10 }
  0x75   :  { %v774_v41 = vmul.f32 %v1464_v23, %v2207_v22  ;;  %v775_v1 = vmul.f32 %v1465_v14, %v2212_v50  ;;  %v776_v2 = vmul.f32 %v1464_v23, %v2217_v53  ;;  %v777_v3 = vmul.f32 %v1465_v14, %v2222_v54 }
  0x76   :  { %v778_v9 = vmul.f32 %v1464_v23, %v2227_v52  ;;  %v779_v60 = vmul.f32 %v1465_v14, %v2232_v47  ;;  %v748_v20 = vadd.f32 %v734_v30, %v702_v28  ;;  %v749_v44 = vadd.f32 %v735_v31, %v703_v29 }
  0x77   :  { %v780_v43 = vmul.f32 %v1464_v23, %v2253_v40  ;;  %v781_v11 = vmul.f32 %v1465_v14, %v2258_v24  ;;  %v782_v12 = vadd.f32 %v768_v57, %v736_v32  ;;  %v783_v13 = vadd.f32 %v769_v61, %v737_v33 }
  0x78   :  { %v784_v46 = vadd.f32 %v770_v62, %v738_v34  ;;  %v785_v45 = vadd.f32 %v771_v58, %v739_v35  ;;  %v786_v55 = vadd.f32 %v772_v59, %v740_v25  ;;  %v787_v56 = vadd.f32 %v773_v42, %v741_v51 }
  0x79   :  { %v788_v63 = vadd.f32 %v774_v41, %v742_v4  ;;  %v789_v0 = vadd.f32 %v775_v1, %v743_v5  ;;  %v790_v6 = vadd.f32 %v776_v2, %v744_v36  ;;  %v791_v7 = vadd.f32 %v777_v3, %v745_v37  ;;  %v1494_v2 = vld [vmem:[%s2572_s0 + $0x2a0] sm:$0xff]  ;;  %v1495_v3 = vld [vmem:[%s2572_s0 + $0x2a8] sm:$0xff] }
  0x7a   :  { %v792_v16 = vadd.f32 %v778_v9, %v746_v38  ;;  %v793_v17 = vadd.f32 %v779_v60, %v747_v39  ;;  %v814_v26 = vmul.f32 %v1480_v48, %v2181_v21  ;;  %v815_v27 = vmul.f32 %v1481_v49, %v2186_v8  ;;  %v1496_v38 = vld [vmem:[%s2573_s1 + $0x120] sm:$0xff]  ;;  %v1497_v39 = vld [vmem:[%s2573_s1 + $0x128] sm:$0xff] }
  0x7b   :  { %v816_v28 = vmul.f32 %v1480_v48, %v2197_v15  ;;  %v817_v29 = vmul.f32 %v1481_v49, %v2202_v10  ;;  %v818_v30 = vmul.f32 %v1480_v48, %v2207_v22  ;;  %v819_v31 = vmul.f32 %v1481_v49, %v2212_v50 }
  0x7c   :  { %v820_v32 = vmul.f32 %v1480_v48, %v2217_v53  ;;  %v821_v33 = vmul.f32 %v1481_v49, %v2222_v54  ;;  %v822_v34 = vmul.f32 %v1480_v48, %v2227_v52  ;;  %v823_v35 = vmul.f32 %v1481_v49, %v2232_v47 }
  0x7d   :  { %v824_v21 = vmul.f32 %v1480_v48, %v2253_v40  ;;  %v825_v8 = vmul.f32 %v1481_v49, %v2258_v24  ;;  %v794_v23 = vadd.f32 %v780_v43, %v748_v20  ;;  %v795_v14 = vadd.f32 %v781_v11, %v749_v44 }
  0x7e   :  { %v826_v25 = vmul.f32 %v1480_v48, %v2281_v18  ;;  %v827_v51 = vmul.f32 %v1481_v49, %v2286_v19  ;;  %v828_v4 = vadd.f32 %v814_v26, %v782_v12  ;;  %v829_v5 = vadd.f32 %v815_v27, %v783_v13 }
  0x7f   :  { %v830_v36 = vadd.f32 %v816_v28, %v784_v46  ;;  %v831_v37 = vadd.f32 %v817_v29, %v785_v45  ;;  %v832_v57 = vadd.f32 %v818_v30, %v786_v55  ;;  %v833_v61 = vadd.f32 %v819_v31, %v787_v56 }
  0x80   :  { %v834_v62 = vadd.f32 %v820_v32, %v788_v63  ;;  %v835_v58 = vadd.f32 %v821_v33, %v789_v0  ;;  %v836_v59 = vadd.f32 %v822_v34, %v790_v6  ;;  %v837_v42 = vadd.f32 %v823_v35, %v791_v7  ;;  %v1510_v34 = vld [vmem:[%s2572_s0 + $0x2b0] sm:$0xff]  ;;  %v1511_v35 = vld [vmem:[%s2572_s0 + $0x2b8] sm:$0xff] }
  0x81   :  { %v838_v41 = vadd.f32 %v824_v21, %v792_v16  ;;  %v839_v1 = vadd.f32 %v825_v8, %v793_v17  ;;  %v860_v9 = vmul.f32 %v1496_v38, %v2197_v15  ;;  %v861_v60 = vmul.f32 %v1497_v39, %v2202_v10  ;;  %v1512_v16 = vld [vmem:[%s2573_s1 + $0x170] sm:$0xff]  ;;  %v1513_v17 = vld [vmem:[%s2573_s1 + $0x178] sm:$0xff] }
  0x82   :  { %v862_v20 = vmul.f32 %v1496_v38, %v2207_v22  ;;  %v863_v44 = vmul.f32 %v1497_v39, %v2212_v50  ;;  %v864_v43 = vmul.f32 %v1496_v38, %v2217_v53  ;;  %v865_v11 = vmul.f32 %v1497_v39, %v2222_v54 }
  0x83   :  { %v866_v12 = vmul.f32 %v1496_v38, %v2227_v52  ;;  %v867_v13 = vmul.f32 %v1497_v39, %v2232_v47  ;;  %v868_v46 = vmul.f32 %v1496_v38, %v2253_v40  ;;  %v869_v45 = vmul.f32 %v1497_v39, %v2258_v24 }
  0x84   :  { %v870_v15 = vmul.f32 %v1496_v38, %v2281_v18  ;;  %v871_v10 = vmul.f32 %v1497_v39, %v2286_v19  ;;  %v840_v48 = vadd.f32 %v826_v25, %v794_v23  ;;  %v841_v49 = vadd.f32 %v827_v51, %v795_v14 }
  0x85   :  { %v872_v55 = vmul.f32 %v1496_v38, %v1494_v2  ;;  %v873_v56 = vmul.f32 %v1497_v39, %v1495_v3  ;;  %v874_v63 = vadd.f32 %v860_v9, %v828_v4  ;;  %v875_v0 = vadd.f32 %v861_v60, %v829_v5  ;;  %v2379_v9 = vld [vmem:[%s2572_s0 + $0x2f0] sm:$0xff]  ;;  %v2384_v60 = vld [vmem:[%s2572_s0 + $0x2f8] sm:$0xff] }
  0x86   :  { %v876_v6 = vadd.f32 %v862_v20, %v830_v36  ;;  %v877_v7 = vadd.f32 %v863_v44, %v831_v37  ;;  %v878_v26 = vadd.f32 %v864_v43, %v832_v57  ;;  %v879_v27 = vadd.f32 %v865_v11, %v833_v61  ;;  %v2389_v20 = vld [vmem:[%s2572_s0 + $0x300] sm:$0xff] }
  0x87   :  { %v880_v28 = vadd.f32 %v866_v12, %v834_v62  ;;  %v881_v29 = vadd.f32 %v867_v13, %v835_v58  ;;  %v882_v30 = vadd.f32 %v868_v46, %v836_v59  ;;  %v883_v31 = vadd.f32 %v869_v45, %v837_v42  ;;  %v2368_v58 = vld [vmem:[%s2572_s0 + $0x2e8] sm:$0xff]  ;;  %v1528_v59 = vld [vmem:[%s2573_s1 + $0x40] sm:$0xff]  ;;  %v2399_v46 = vld [vmem:[%s2572_s0 + $0x310] sm:$0xff] }
  0x88   :  { %v884_v32 = vadd.f32 %v870_v15, %v838_v41  ;;  %v885_v33 = vadd.f32 %v871_v10, %v839_v1  ;;  %v906_v21 = vmul.f32 %v1512_v16, %v2207_v22  ;;  %v907_v8 = vmul.f32 %v1513_v17, %v2212_v50  ;;  %v1514_v50 = vld [vmem:[%s2572_s0 + $0x2c0] sm:$0xff]  ;;  %v1529_v42 = vld [vmem:[%s2573_s1 + $0x48] sm:$0xff]  ;;  %v2404_v45 = vld [vmem:[%s2572_s0 + $0x318] sm:$0xff] }
  0x89   :  { %v908_v23 = vmul.f32 %v1512_v16, %v2217_v53  ;;  %v909_v14 = vmul.f32 %v1513_v17, %v2222_v54  ;;  %v910_v25 = vmul.f32 %v1512_v16, %v2227_v52  ;;  %v911_v51 = vmul.f32 %v1513_v17, %v2232_v47  ;;  %v1515_v53 = vld [vmem:[%s2572_s0 + $0x2c8] sm:$0xff]  ;;  %v2409_v15 = vld [vmem:[%s2572_s0 + $0x320] sm:$0xff] }
  0x8a   :  { %v912_v4 = vmul.f32 %v1512_v16, %v2253_v40  ;;  %v913_v5 = vmul.f32 %v1513_v17, %v2258_v24  ;;  %v914_v36 = vmul.f32 %v1512_v16, %v2281_v18  ;;  %v915_v37 = vmul.f32 %v1513_v17, %v2286_v19  ;;  %v1516_v24 = vld [vmem:[%s2572_s0 + $0x2d0] sm:$0xff]  ;;  %v1517_v18 = vld [vmem:[%s2572_s0 + $0x2d8] sm:$0xff]  ;;  %v2363_v19 = vld [vmem:[%s2572_s0 + $0x2e0] sm:$0xff] }
  0x8b   :  { %v916_v38 = vmul.f32 %v1512_v16, %v1494_v2  ;;  %v917_v22 = vmul.f32 %v1513_v17, %v1495_v3  ;;  %v886_v54 = vadd.f32 %v872_v55, %v840_v48  ;;  %v887_v52 = vadd.f32 %v873_v56, %v841_v49  ;;  %v2394_v13 = vld [vmem:[%s2572_s0 + $0x308] sm:$0xff] }
  0x8c   :  { %v918_v47 = vmul.f32 %v1512_v16, %v1510_v34  ;;  %v919_v40 = vmul.f32 %v1513_v17, %v1511_v35  ;;  %v920_v39 = vadd.f32 %v906_v21, %v874_v63  ;;  %v921_v57 = vadd.f32 %v907_v8, %v875_v0  ;;  %v2414_v10 = vld [vmem:[%s2572_s0 + $0x328] sm:$0xff]  ;;  %v1544_v21 = vld [vmem:[%s2573_s1 + $0x90] sm:$0xff]  ;;  %v1545_v8 = vld [vmem:[%s2573_s1 + $0x98] sm:$0xff] }
  0x8d   :  { %v922_v61 = vadd.f32 %v908_v23, %v876_v6  ;;  %v923_v62 = vadd.f32 %v909_v14, %v877_v7  ;;  %v924_v41 = vadd.f32 %v910_v25, %v878_v26  ;;  %v925_v1 = vadd.f32 %v911_v51, %v879_v27 }
  0x8e   :  { %v926_v2 = vadd.f32 %v912_v4, %v880_v28  ;;  %v927_v3 = vadd.f32 %v913_v5, %v881_v29  ;;  %v928_v44 = vadd.f32 %v914_v36, %v882_v30  ;;  %v929_v43 = vadd.f32 %v915_v37, %v883_v31 }
  0x8f   :  { %v930_v11 = vadd.f32 %v916_v38, %v884_v32  ;;  %v931_v12 = vadd.f32 %v917_v22, %v885_v33  ;;  %v952_v48 = vmul.f32 %v1528_v59, %v1514_v50  ;;  %v953_v49 = vmul.f32 %v1529_v42, %v1515_v53  ;;  %v2435_v38 = vld [vmem:[%s2572_s0 + $0x330] sm:$0xff]  ;;  %v2440_v22 = vld [vmem:[%s2572_s0 + $0x338] sm:$0xff] }
  0x90   :  { %v954_v55 = vmul.f32 %v1528_v59, %v1516_v24  ;;  %v955_v56 = vmul.f32 %v1529_v42, %v1517_v18  ;;  %v956_v63 = vmul.f32 %v1528_v59, %v2363_v19  ;;  %v957_v0 = vmul.f32 %v1529_v42, %v2368_v58 }
  0x91   :  { %v958_v6 = vmul.f32 %v1528_v59, %v2379_v9  ;;  %v959_v7 = vmul.f32 %v1529_v42, %v2384_v60  ;;  %v960_v16 = vmul.f32 %v1528_v59, %v2389_v20  ;;  %v961_v17 = vmul.f32 %v1529_v42, %v2394_v13 }
  0x92   :  { %v962_v26 = vmul.f32 %v1528_v59, %v2399_v46  ;;  %v963_v27 = vmul.f32 %v1529_v42, %v2404_v45  ;;  %v932_v28 = vadd.f32 %v918_v47, %v886_v54  ;;  %v933_v29 = vadd.f32 %v919_v40, %v887_v52 }
  0x93   :  { %v964_v30 = vmul.f32 %v1528_v59, %v2409_v15  ;;  %v965_v31 = vmul.f32 %v1529_v42, %v2414_v10  ;;  %v966_v32 = vadd.f32 %v952_v48, %v920_v39  ;;  %v967_v33 = vadd.f32 %v953_v49, %v921_v57 }
  0x94   :  { %v968_v34 = vadd.f32 %v954_v55, %v922_v61  ;;  %v969_v35 = vadd.f32 %v955_v56, %v923_v62  ;;  %v970_v23 = vadd.f32 %v956_v63, %v924_v41  ;;  %v971_v14 = vadd.f32 %v957_v0, %v925_v1 }
  0x95   :  { %v972_v25 = vadd.f32 %v958_v6, %v926_v2  ;;  %v973_v51 = vadd.f32 %v959_v7, %v927_v3  ;;  %v974_v4 = vadd.f32 %v960_v16, %v928_v44  ;;  %v975_v5 = vadd.f32 %v961_v17, %v929_v43  ;;  %v2463_v16 = vld [vmem:[%s2572_s0 + $0x340] sm:$0xff]  ;;  %v2468_v17 = vld [vmem:[%s2572_s0 + $0x348] sm:$0xff] }
  0x96   :  { %v976_v36 = vadd.f32 %v962_v26, %v930_v11  ;;  %v977_v37 = vadd.f32 %v963_v27, %v931_v12  ;;  %v998_v50 = vmul.f32 %v1544_v21, %v1516_v24  ;;  %v999_v53 = vmul.f32 %v1545_v8, %v1517_v18  ;;  %v1560_v11 = vld [vmem:[%s2573_s1 + $0xe0] sm:$0xff]  ;;  %v1561_v12 = vld [vmem:[%s2573_s1 + $0xe8] sm:$0xff] }
  0x97   :  { %v1000_v54 = vmul.f32 %v1544_v21, %v2363_v19  ;;  %v1001_v52 = vmul.f32 %v1545_v8, %v2368_v58  ;;  %v1002_v47 = vmul.f32 %v1544_v21, %v2379_v9  ;;  %v1003_v40 = vmul.f32 %v1545_v8, %v2384_v60 }
  0x98   :  { %v1004_v39 = vmul.f32 %v1544_v21, %v2389_v20  ;;  %v1005_v57 = vmul.f32 %v1545_v8, %v2394_v13  ;;  %v1006_v61 = vmul.f32 %v1544_v21, %v2399_v46  ;;  %v1007_v62 = vmul.f32 %v1545_v8, %v2404_v45 }
  0x99   :  { %v1008_v59 = vmul.f32 %v1544_v21, %v2409_v15  ;;  %v1009_v24 = vmul.f32 %v1545_v8, %v2414_v10  ;;  %v978_v18 = vadd.f32 %v964_v30, %v932_v28  ;;  %v979_v42 = vadd.f32 %v965_v31, %v933_v29 }
  0x9a   :  { %v1010_v41 = vmul.f32 %v1544_v21, %v2435_v38  ;;  %v1011_v1 = vmul.f32 %v1545_v8, %v2440_v22  ;;  %v1012_v2 = vadd.f32 %v998_v50, %v966_v32  ;;  %v1013_v3 = vadd.f32 %v999_v53, %v967_v33 }
  0x9b   :  { %v1014_v44 = vadd.f32 %v1000_v54, %v968_v34  ;;  %v1015_v43 = vadd.f32 %v1001_v52, %v969_v35  ;;  %v1016_v48 = vadd.f32 %v1002_v47, %v970_v23  ;;  %v1017_v49 = vadd.f32 %v1003_v40, %v971_v14 }
  0x9c   :  { %v1018_v55 = vadd.f32 %v1004_v39, %v972_v25  ;;  %v1019_v56 = vadd.f32 %v1005_v57, %v973_v51  ;;  %v1020_v63 = vadd.f32 %v1006_v61, %v974_v4  ;;  %v1021_v0 = vadd.f32 %v1007_v62, %v975_v5  ;;  %v1576_v25 = vld [vmem:[%s2573_s1 + $0x130] sm:$0xff] }
  0x9d   :  { %v1022_v6 = vadd.f32 %v1008_v59, %v976_v36  ;;  %v1023_v7 = vadd.f32 %v1009_v24, %v977_v37  ;;  %v1044_v26 = vmul.f32 %v1560_v11, %v2363_v19  ;;  %v1045_v27 = vmul.f32 %v1561_v12, %v2368_v58  ;;  %v1577_v37 = vld [vmem:[%s2573_s1 + $0x138] sm:$0xff]  ;;  %v1574_v61 = vld [vmem:[%s2572_s0 + $0x350] sm:$0xff] }
  0x9e   :  { %v1046_v28 = vmul.f32 %v1560_v11, %v2379_v9  ;;  %v1047_v29 = vmul.f32 %v1561_v12, %v2384_v60  ;;  %v1048_v30 = vmul.f32 %v1560_v11, %v2389_v20  ;;  %v1049_v31 = vmul.f32 %v1561_v12, %v2394_v13 }
  0x9f   :  { %v1050_v32 = vmul.f32 %v1560_v11, %v2399_v46  ;;  %v1051_v33 = vmul.f32 %v1561_v12, %v2404_v45  ;;  %v1024_v34 = vadd.f32 %v1010_v41, %v978_v18  ;;  %v1052_v35 = vmul.f32 %v1560_v11, %v2409_v15 }
  0xa0   :  { %v1053_v21 = vmul.f32 %v1561_v12, %v2414_v10  ;;  %v1054_v19 = vmul.f32 %v1560_v11, %v2435_v38  ;;  %v1025_v58 = vadd.f32 %v1011_v1, %v979_v42  ;;  %v1055_v8 = vmul.f32 %v1561_v12, %v2440_v22 }
  0xa1   :  { %v1056_v23 = vmul.f32 %v1560_v11, %v2463_v16  ;;  %v1057_v14 = vmul.f32 %v1561_v12, %v2468_v17  ;;  %v1058_v51 = vadd.f32 %v1044_v26, %v1012_v2  ;;  %v1059_v4 = vadd.f32 %v1045_v27, %v1013_v3  ;;  %v1593_v11 = vld [vmem:[%s2573_s1 + $0x188] sm:$0xff]  ;;  %v1575_v12 = vld [vmem:[%s2572_s0 + $0x358] sm:$0xff] }
  0xa2   :  { %v1060_v5 = vadd.f32 %v1046_v28, %v1014_v44  ;;  %v1061_v36 = vadd.f32 %v1047_v29, %v1015_v43  ;;  %v1062_v50 = vadd.f32 %v1048_v30, %v1016_v48  ;;  %v1063_v53 = vadd.f32 %v1049_v31, %v1017_v49 }
  0xa3   :  { %v1064_v54 = vadd.f32 %v1050_v32, %v1018_v55  ;;  %v1065_v52 = vadd.f32 %v1051_v33, %v1019_v56  ;;  %v1066_v47 = vadd.f32 %v1052_v35, %v1020_v63  ;;  %v1067_v40 = vadd.f32 %v1053_v21, %v1021_v0 }
  0xa4   :  { %v1068_v39 = vadd.f32 %v1054_v19, %v1022_v6  ;;  %v1090_v57 = vmul.f32 %v1576_v25, %v2379_v9  ;;  %v1091_v62 = vmul.f32 %v1577_v37, %v2384_v60  ;;  %v1092_v59 = vmul.f32 %v1576_v25, %v2389_v20  ;;  %v1592_v60 = vld [vmem:[%s2573_s1 + $0x180] sm:$0xff] }
  0xa5   :  { %v1093_v24 = vmul.f32 %v1577_v37, %v2394_v13  ;;  %v1094_v18 = vmul.f32 %v1576_v25, %v2399_v46  ;;  %v1069_v42 = vadd.f32 %v1055_v8, %v1023_v7  ;;  %v1070_v41 = vadd.f32 %v1056_v23, %v1024_v34 }
  0xa6   :  { %v1071_v1 = vadd.f32 %v1057_v14, %v1025_v58  ;;  %v1095_v2 = vmul.f32 %v1577_v37, %v2404_v45  ;;  %v1096_v3 = vmul.f32 %v1576_v25, %v2409_v15  ;;  %v1097_v9 = vmul.f32 %v1577_v37, %v2414_v10 }
  0xa7   :  { %v1098_v44 = vmul.f32 %v1576_v25, %v2435_v38  ;;  %v1099_v43 = vmul.f32 %v1577_v37, %v2440_v22  ;;  %v1100_v48 = vmul.f32 %v1576_v25, %v2463_v16  ;;  %v1101_v49 = vmul.f32 %v1577_v37, %v2468_v17 }
  0xa8   :  { %v1102_v55 = vmul.f32 %v1576_v25, %v1574_v61  ;;  %v1104_v56 = vadd.f32 %v1090_v57, %v1058_v51  ;;  %v1105_v63 = vadd.f32 %v1091_v62, %v1059_v4  ;;  %v1106_v0 = vadd.f32 %v1092_v59, %v1060_v5 }
  0xa9   :  { %v1107_v6 = vadd.f32 %v1093_v24, %v1061_v36  ;;  %v1108_v7 = vadd.f32 %v1094_v18, %v1062_v50  ;;  %v1136_v26 = vmul.f32 %v1592_v60, %v2389_v20  ;;  %v1137_v27 = vmul.f32 %v1593_v11, %v2394_v13 }
  0xaa   :  { %v1138_v28 = vmul.f32 %v1592_v60, %v2399_v46  ;;  %v1139_v29 = vmul.f32 %v1593_v11, %v2404_v45  ;;  %v1103_v30 = vmul.f32 %v1577_v37, %v1575_v12  ;;  %v1109_v31 = vadd.f32 %v1095_v2, %v1063_v53 }
  0xab   :  { %v1140_v32 = vmul.f32 %v1592_v60, %v2409_v15  ;;  %v1141_v33 = vmul.f32 %v1593_v11, %v2414_v10  ;;  %v1110_v34 = vadd.f32 %v1096_v3, %v1064_v54  ;;  %v1111_v35 = vadd.f32 %v1097_v9, %v1065_v52  ;;  %v1590_v15 = vld [vmem:[%s2572_s0 + $0x360] sm:$0xff] }
  0xac   :  { %v1142_v21 = vmul.f32 %v1592_v60, %v2435_v38  ;;  %v1143_v19 = vmul.f32 %v1593_v11, %v2440_v22  ;;  %v1112_v58 = vadd.f32 %v1098_v44, %v1066_v47  ;;  %v1113_v20 = vadd.f32 %v1099_v43, %v1067_v40  ;;  %v1591_v22 = vld [vmem:[%s2572_s0 + $0x368] sm:$0xff] }
  0xad   :  { %v1150_v8 = vadd.f32 %v1136_v26, %v1104_v56  ;;  %v1151_v13 = vadd.f32 %v1137_v27, %v1105_v63  ;;  %v1144_v46 = vmul.f32 %v1592_v60, %v2463_v16  ;;  %v1152_v23 = vadd.f32 %v1138_v28, %v1106_v0 }
  0xae   :  { %v1153_v45 = vadd.f32 %v1139_v29, %v1107_v6  ;;  %v1154_v14 = vadd.f32 %v1140_v32, %v1108_v7  ;;  %v1114_v25 = vadd.f32 %v1100_v48, %v1068_v39  ;;  %v1115_v51 = vadd.f32 %v1101_v49, %v1069_v42 }
  0xaf   :  { %v1145_v10 = vmul.f32 %v1593_v11, %v2468_v17  ;;  %v1155_v38 = vadd.f32 %v1141_v33, %v1109_v31  ;;  %v1146_v4 = vmul.f32 %v1592_v60, %v1574_v61  ;;  %v1147_v5 = vmul.f32 %v1593_v11, %v1575_v12 }
  0xb0   :  { %v1156_v36 = vadd.f32 %v1142_v21, %v1110_v34  ;;  %v1157_v16 = vadd.f32 %v1143_v19, %v1111_v35  ;;  %v1164_v37 = vmax.f32 %v1150_v8, 0.0  ;;  %v1165_v50 = vmax.f32 %v1151_v13, 0.0 }
  0xb1   :  { %v1166_v53 = vmax.f32 %v1152_v23, 0.0  ;;  %v1167_v54 = vmax.f32 %v1153_v45, 0.0  ;;  %v1116_v52 = vadd.f32 %v1102_v55, %v1070_v41  ;;  %v1148_v47 = vmul.f32 %v1592_v60, %v1590_v15 }
  0xb2   :  { %v1158_v40 = vadd.f32 %v1144_v46, %v1112_v58  ;;  %v1168_v39 = vmax.f32 %v1154_v14, 0.0  ;;  %v1117_v57 = vadd.f32 %v1103_v30, %v1071_v1  ;;  %v1149_v62 = vmul.f32 %v1593_v11, %v1591_v22 }
  0xb3   :  { %v1159_v17 = vadd.f32 %v1145_v10, %v1113_v20  ;;  %v1169_v59 = vmax.f32 %v1155_v38, 0.0  ;;  %v1160_v24 = vadd.f32 %v1146_v4, %v1114_v25  ;;  %v1170_v18 = vmax.f32 %v1156_v36, 0.0 }
  0xb4   :  { %v1178_v42 = vmin.f32 %v1164_v37, 1.0  ;;  %v1179_v2 = vmin.f32 %v1165_v50, 1.0  ;;  %v1161_v61 = vadd.f32 %v1147_v5, %v1115_v51  ;;  %v1171_v3 = vmax.f32 %v1157_v16, 0.0 }
  0xb5   :  { %v1180_v9 = vmin.f32 %v1166_v53, 1.0  ;;  %v1181_v44 = vmin.f32 %v1167_v54, 1.0  ;;  %v1162_v43 = vadd.f32 %v1148_v47, %v1116_v52  ;;  %v1172_v12 = vmax.f32 %v1158_v40, 0.0 }
  0xb6   :  { %v1182_v48 = vmin.f32 %v1168_v39, 1.0  ;;  %1192 = vst [vmem:[%s2575_s3] sm:$0xff] %v1178_v42  ;;  %v1163_v41 = vadd.f32 %v1149_v62, %v1117_v57  ;;  %v1173_v1 = vmax.f32 %v1159_v17, 0.0  ;;  %v1183_v60 = vmin.f32 %v1169_v59, 1.0 }
  0xb7   :  { %1193 = vst [vmem:[%s2575_s3 + $0x8] sm:$0xff] %v1179_v2  ;;  %v1174_v11 = vmax.f32 %v1160_v24, 0.0  ;;  %v1184_v49 = vmin.f32 %v1170_v18, 1.0  ;;  %v1175_v55 = vmax.f32 %v1161_v61, 0.0  ;;  %v1185_v56 = vmin.f32 %v1171_v3, 1.0 }
  0xb8   :  { %1194 = vst [vmem:[%s2575_s3 + $0x10] sm:$0xff] %v1180_v9  ;;  %v1176_v63 = vmax.f32 %v1162_v43, 0.0  ;;  %v1186_v0 = vmin.f32 %v1172_v12, 1.0  ;;  %v1177_v6 = vmax.f32 %v1163_v41, 0.0  ;;  %v1187_v7 = vmin.f32 %v1173_v1, 1.0 }
  0xb9   :  { %1195 = vst [vmem:[%s2575_s3 + $0x18] sm:$0xff] %v1181_v44  ;;  %v1188_v26 = vmin.f32 %v1174_v11, 1.0  ;;  %v1189_v27 = vmin.f32 %v1175_v55, 1.0 }
  0xba   :  { %1196 = vst [vmem:[%s2575_s3 + $0x20] sm:$0xff] %v1182_v48  ;;  %v1190_v28 = vmin.f32 %v1176_v63, 1.0  ;;  %v1191_v29 = vmin.f32 %v1177_v6, 1.0 }
  0xbb   :  { %1197 = vst [vmem:[%s2575_s3 + $0x28] sm:$0xff] %v1183_v60 }
  0xbc   :  { %1198 = vst [vmem:[%s2575_s3 + $0x30] sm:$0xff] %v1184_v49 }
  0xbd   :  { %1199 = vst [vmem:[%s2575_s3 + $0x38] sm:$0xff] %v1185_v56 }
  0xbe   :  { %1200 = vst [vmem:[%s2575_s3 + $0x40] sm:$0xff] %v1186_v0 }
  0xbf   :  { %1201 = vst [vmem:[%s2575_s3 + $0x48] sm:$0xff] %v1187_v7 }
  0xc0   :  { %1202 = vst [vmem:[%s2575_s3 + $0x50] sm:$0xff] %v1188_v26 }
  0xc1   :  { %1203 = vst [vmem:[%s2575_s3 + $0x58] sm:$0xff] %v1189_v27 }
  0xc2   :  { %1204 = vst [vmem:[%s2575_s3 + $0x60] sm:$0xff] %v1190_v28 }
  0xc3   :  { %1205 = vst [vmem:[%s2575_s3 + $0x68] sm:$0xff] %v1191_v29 }

</bundles_post_ra>
